<compile_context>
chip_gen: v6e
topology: v6e:2x2x1
jax: 0.10.0
libtpu: 0.0.40
codegen_flags: <defaults>
</compile_context>

<pallas_src>
import functools
import math

import jax
import jax.numpy as jnp
from jax.experimental import pallas as pl
from jax.experimental.pallas import tpu as pltpu


def _divisors(n):
    return [d for d in range(1, n + 1) if n % d == 0]


def _pick_group(C, H2, W2, k):
    """Number of (c, h2) rows packed per output row.

    g must divide both C*H2 and k*H2 so the real/zero-pad channel boundary
    stays packed-row aligned, i.e. g | H2*gcd(C, k)  (g | C*H2 when k == 0).
    Pick the smallest such g with output lane width g*W2 >= 128 (one vreg);
    bigger g only multiplies MXU work (block-diagonal sel) for little extra
    store-side benefit.
    """
    allowed = H2 * (math.gcd(C, k) if k > 0 else C)
    for g in _divisors(allowed):
        if g * W2 >= 128:
            return g
    return allowed


def _pick_batch_block(N, per_batch_bytes, target_bytes=2 << 20):
    """Batch elements per grid step: largest divisor of N giving a <=~2 MiB
    input block while keeping >= 2 grid steps (v7x has 2 TensorCores)."""
    best = 1
    for nb in _divisors(N):
        if nb * per_batch_bytes <= target_bytes and (N == 1 or N // nb >= 2):
            best = max(best, nb)
    return best


def _make_kernel(nb, rows_real, rows_pad, lane):
    """rows_real / rows_pad = packed real / zero-padded rows per batch elem."""

    def kernel(sel_ref, x_ref, o_ref):
        # sel_ref: (g*2W, g*W2)          block-diagonal one-hot selection
        # x_ref:   (NB, C*H2/g, g*2W)
        # o_ref:   (NB, C_out*H2/g, g*W2)
        sel = sel_ref[...]
        for b in range(nb):  # static unroll; NB is small
            # One-hot selection on the MXU; HIGHEST keeps the f32 LHS exact.
            y = jnp.dot(x_ref[b], sel,
                        preferred_element_type=jnp.float32,
                        precision=jax.lax.Precision.HIGHEST)
            if rows_pad > 0:
                # Zero-padded extra channels built in-vreg so the whole tile
                # is written with a single lane-dense store (no mid-tile
                # masked partial stores at the real/pad boundary).
                y = jnp.concatenate(
                    [y, jnp.zeros((rows_pad, lane), jnp.float32)], axis=0)
            o_ref[b] = y.astype(o_ref.dtype)

    return kernel


@functools.partial(jax.jit, static_argnames=("n_layers",))
def shortcut1(x: jax.Array, n_layers: int) -> jax.Array:
    """Pallas implementation of Shortcut1.forward (NCHW)."""
    if not jnp.issubdtype(x.dtype, jnp.floating):
        raise NotImplementedError(
            "shortcut1 Pallas kernel supports float dtypes only")

    N, C, H, W = x.shape
    if H % 2 == 1:
        # Rare: pad one (never-selected) odd row so H splits as (H2, 2).
        x = jnp.pad(x, ((0, 0), (0, 0), (0, 1), (0, 0)))
        H += 1
    H2 = H // 2
    W2 = (W + 1) // 2
    k = n_layers - n_layers // 2            # extra zero channels appended
    C_out = C + k

    g = _pick_group(C, H2, W2, k)           # (c, h2) rows packed per row
    rows_real = (C * H2) // g               # packed real rows / batch elem
    rows_pad = (k * H2) // g                # packed zero rows / batch elem
    rows_out = rows_real + rows_pad         # == C_out*H2 // g
    k_in = g * 2 * W                        # packed input lane width
    lane = g * W2                           # packed output lane width (>=128)

    # Free contiguous reshape: packed row r of batch n holds the g original
    # rows (c*H2 + h2) in [r*g, (r+1)*g), each as [x[c,2h2,:], x[c,2h2+1,:]].
    xr = x.reshape(N, rows_real, k_in)

    # Block-diagonal one-hot: column b*W2 + w2 selects flat element
    # b*2W + 2*w2, i.e. sub-row b's even row, even column.  Exact selection.
    i = jnp.arange(k_in)[:, None]
    j = jnp.arange(lane)[None, :]
    sel = ((i // (2 * W) == j // W2)
           & (i % (2 * W) == 2 * (j % W2))).astype(x.dtype)

    itemsize = x.dtype.itemsize
    per_batch_in_bytes = C * H * W * itemsize
    nb = _pick_batch_block(N, per_batch_in_bytes)

    kernel = _make_kernel(nb, rows_real, rows_pad, lane)

    bytes_accessed = (xr.size + sel.size + N * rows_out * lane) * itemsize

    out = pl.pallas_call(
        kernel,
        out_shape=jax.ShapeDtypeStruct((N, rows_out, lane), x.dtype),
        grid=(N // nb,),
        in_specs=[
            # Small selection matrix; constant index_map -> stays resident.
            pl.BlockSpec((k_in, lane), lambda n: (0, 0)),
            # NB batch elements (all real channels) per step, one big block.
            pl.BlockSpec((nb, rows_real, k_in), lambda n: (n, 0, 0)),
        ],
        out_specs=pl.BlockSpec((nb, rows_out, lane), lambda n: (n, 0, 0)),
        compiler_params=pltpu.CompilerParams(
            dimension_semantics=("parallel",),
        ),
        cost_estimate=pl.CostEstimate(
            flops=0, transcendentals=0, bytes_accessed=bytes_accessed),
    )(sel, xr)

    # Free contiguous reshape back to NCHW.
    return out.reshape(N, C_out, H2, W2)


if __name__ == "__main__":
    n_layers = 8
    N, C, H, W = 2, 4, 16, 16

    key = jax.random.PRNGKey(0)
    x = jax.random.normal(key, (N, C, H, W), dtype=jnp.float32)

    y = shortcut1(x, n_layers)
    jax.block_until_ready(y)

    # Pure-JAX reference of the PyTorch semantics.
    k = n_layers - n_layers // 2
    y_ref = jnp.pad(x[:, :, ::2, ::2], ((0, 0), (0, k), (0, 0), (0, 0)))
    assert y.shape == y_ref.shape, (y.shape, y_ref.shape)
    assert jnp.allclose(y, y_ref, atol=1e-6), float(jnp.max(jnp.abs(y - y_ref)))

    print("KERNEL_OK")
</pallas_src>

<mosaic_0001>
module attributes {stable_mosaic.version = 11 : i64} {
  func.func @kernel(%arg0: i32, %arg1: memref<512x128xf32, #tpu.memory_space<vmem>>, %arg2: memref<1x2x512xf32, #tpu.memory_space<vmem>>, %arg3: memref<1x4x128xf32, #tpu.memory_space<vmem>>) attributes {dimension_semantics = [#tpu.dimension_semantics<parallel>], iteration_bounds = array<i64: 2>, scalar_prefetch = 0 : i64, scratch_operands = 0 : i64, tpu.core_type = #tpu.core_type<tc>, window_params = [{pipeline_mode = #tpu.pipeline_mode<synchronous>, transform_indices = @transform_0, window_bounds = array<i64: 512, 128>}, {transform_indices = @transform_1, window_bounds = array<i64: 1, 2, 512>}, {transform_indices = @transform_2, window_bounds = array<i64: 1, 4, 128>}]} {
    %c0 = arith.constant 0 : index
    %c0_0 = arith.constant 0 : index
    %0 = vector.load %arg1[%c0, %c0_0] : memref<512x128xf32, #tpu.memory_space<vmem>>, vector<512x128xf32>
    %c0_1 = arith.constant 0 : index
    %c0_2 = arith.constant 0 : index
    %c0_3 = arith.constant 0 : index
    %1 = vector.load %arg2[%c0_1, %c0_2, %c0_3] : memref<1x2x512xf32, #tpu.memory_space<vmem>>, vector<1x2x512xf32>
    %2 = vector.shape_cast %1 : vector<1x2x512xf32> to vector<2x512xf32>
    %cst = arith.constant dense<0.000000e+00> : vector<2x128xf32>
    %3 = tpu.matmul %2, %0, %cst {dimension_numbers = #tpu.dot_dimension_numbers<[1], [0], [0], [1], [0, 0, 1, 1], [], []>, precision = #tpu.contract_precision<fp32>} : vector<2x512xf32>, vector<512x128xf32>, vector<2x128xf32> -> vector<2x128xf32>
    %cst_4 = arith.constant 0.000000e+00 : f32
    %4 = vector.broadcast %cst_4 : f32 to vector<2x128xf32>
    %5 = tpu.concatenate %3, %4 in 0 : vector<2x128xf32>, vector<2x128xf32> -> vector<4x128xf32>
    %c0_5 = arith.constant 0 : index
    %c0_6 = arith.constant 0 : index
    %c0_7 = arith.constant 0 : index
    %6 = vector.load %arg3[%c0_5, %c0_6, %c0_7] : memref<1x4x128xf32, #tpu.memory_space<vmem>>, vector<1x4x128xf32>
    %7 = vector.shape_cast %6 : vector<1x4x128xf32> to vector<4x128xf32>
    %8 = vector.shape_cast %5 : vector<4x128xf32> to vector<1x4x128xf32>
    tpu.vector_store %arg3[%c0_5, %c0_6, %c0_7], %8 {strides = array<i32>} : memref<1x4x128xf32, #tpu.memory_space<vmem>>, vector<1x4x128xf32>,
    return
  }
  func.func @transform_0(%arg0: i32) -> (i32, i32) {
    %c0_i32 = arith.constant 0 : i32
    %c0_i32_0 = arith.constant 0 : i32
    %c0_i32_1 = arith.constant 0 : i32
    return %c0_i32, %c0_i32_0 : i32, i32
  }
  func.func @transform_1(%arg0: i32) -> (i32, i32, i32) {
    %c0_i32 = arith.constant 0 : i32
    %c0_i32_0 = arith.constant 0 : i32
    %c0_i32_1 = arith.constant 0 : i32
    return %arg0, %c0_i32, %c0_i32_0 : i32, i32, i32
  }
  func.func @transform_2(%arg0: i32) -> (i32, i32, i32) {
    %c0_i32 = arith.constant 0 : i32
    %c0_i32_0 = arith.constant 0 : i32
    %c0_i32_1 = arith.constant 0 : i32
    return %arg0, %c0_i32, %c0_i32_0 : i32, i32, i32
  }
}

</mosaic_0001>

<bundles_post_ra>
// kernel: shortcut1.1
= control target key start
LH: loop header
LB: loop body
LE: loop exit
PB: predicated region body
PF: predicated region fallthrough
CT: control target
= control target key end

     0   :  { %s2474_s9 = smov 0   ;;  %s3907_s0 = inlined_call_operand.vmem [shape: f32[512,128], index: 0, kind: input, shape index: {}]   ;;  %s3908_s1 = inlined_call_operand.vmem [shape: f32[2,2,512], index: 1, kind: input, shape index: {}]   ;;  %s3909_s2 = inlined_call_operand.vmem [shape: f32[2,4,128], index: 2, kind: output, shape index: {}]  }
   0x1 LB: > { %s2009_s10 = sadd.s32 4294967295, %s2456_s9   ;;  %p2013_p0 = scmp.ge.s32.totalorder %s2456_s9, 1  ;;  %s2456_s9 = sphi %s2474_s9, %s12_s9  }
   0x2   : > { %p112_p1 = scmp.lt.s32.totalorder %s2456_s9, 3 }
   0x4   : > { %p113_p2 = pnand %p2013_p0, %p112_p1 }
   0x6   : > { %116 = sbr.rel (%p113_p2) target bundleno = 438 (0x1b6), region = 28 }
   0xb   : > { %v173_v0 = vld [vmem:[%s3907_s0 + $0xf8] sm:$0xff]  ;;  %v172_v2 = vld [vmem:[%s3907_s0 + $0xf0] sm:$0xff]  ;;  %v171_v7 = vld [vmem:[%s3907_s0 + $0xe8] sm:$0xff]  ;;  %v2458_v16 = vmov 1983009808   ;;  %p2780_p3 = scmp.lt.s32.totalorder %s2009_s10, 1 }
   0xc   : > { %v157_v1 = vld [vmem:[%s3907_s0 + $0x78] sm:$0xff]  ;;  %v2491_v3 = vand.u32 4294901760, %v173_v0  ;;  %v2495_v5 = vand.u32 4294901760, %v172_v2  ;;  %v156_v6 = vld [vmem:[%s3907_s0 + $0x70] sm:$0xff]  ;;  %v155_v8 = vld [vmem:[%s3907_s0 + $0x68] sm:$0xff]  ;;  %v2508_v11 = vand.u32 4294901760, %v171_v7  ;;  %v2523_v17 = vunpack.c.l.s4 %v2458_v16 }
   0xd   : > { %v2493_v4 = vand.u32 4294901760, %v157_v1  ;;  %v2506_v10 = vand.u32 4294901760, %v156_v6  ;;  %v2510_v12 = vand.u32 4294901760, %v155_v8  ;;  %v170_v13 = vld [vmem:[%s3907_s0 + $0xe0] sm:$0xff]  ;;  %v2521_v15 = vld [vmem:[%s3907_s0 + $0xd8] sm:$0xff]  ;;  %v2544_v23 = vld [vmem:[%s3907_s0 + $0xd0] sm:$0xff] }
   0xe   : > { %v154_v14 = vld [vmem:[%s3907_s0 + $0x60] sm:$0xff]  ;;  %2020 = vmatprep.subr.mxu0 %v2491_v3  ;;  %v2526_v18 = vand.u32 4294901760, %v170_v13  ;;  %v2531_v20 = vand.u32 4294901760, %v2521_v15  ;;  %v2534_v21 = vsub.f32 %v173_v0, %v2491_v3  ;;  %v2539_v22 = vld [vmem:[%s3907_s0 + $0x58] sm:$0xff]  ;;  %v2549_v24 = vld [vmem:[%s3907_s0 + $0x50] sm:$0xff]  ;;  %v2559_v27 = vand.u32 4294901760, %v2544_v23 }
   0xf   : > { %v2528_v19 = vand.u32 4294901760, %v154_v14  ;;  %2021 = vmatpush3.msra.mxu0 %v2493_v4  ;;  %v2553_v25 = vand.u32 4294901760, %v2539_v22  ;;  %v2556_v26 = vsub.f32 %v157_v1, %v2493_v4  ;;  %v2562_v28 = vsub.f32 %v172_v2, %v2495_v5  ;;  %v2567_v29 = vld [vmem:[%s3907_s0 + $0xc8] sm:$0xff]  ;;  %v2577_v31 = vld [vmem:[%s3907_s0 + $0xc0] sm:$0xff]  ;;  %v2629_v49 = vld [vmem:[%s3907_s0 + $0xb8] sm:$0xff]  ;;  %s4279_s10 = smov (!%p2780_p3, %s2009_s10), 1 }
  0x10   : > { %4054 = vst [vmem:[#allocation2_spill] sm:$0xff] %v2534_v21  ;;  %v2572_v30 = vld [vmem:[%s3907_s0 + $0x48] sm:$0xff]  ;;  %2022 = vmatprep.subr.mxu0 %v2495_v5  ;;  %v3923_v32 = vand.u32 4294901760, %v2534_v21  ;;  %v2582_v33 = vand.u32 4294901760, %v2549_v24  ;;  %v2585_v34 = vsub.f32 %v156_v6, %v2506_v10  ;;  %v2588_v35 = vand.u32 4294901760, %v2567_v29  ;;  %v2602_v40 = vld [vmem:[%s3907_s0 + $0x40] sm:$0xff] }
  0x11   : > { %2023 = vmatpush3.msra.mxu0 %v2506_v10  ;;  %v3921_v36 = vand.u32 4294901760, %v2556_v26  ;;  %v3919_v37 = vand.u32 4294901760, %v2562_v28  ;;  %v2594_v38 = vsub.f32 %v171_v7, %v2508_v11  ;;  %v2597_v39 = vand.u32 4294901760, %v2572_v30  ;;  %v2642_v54 = vld [vmem:[%s3907_s0 + $0x38] sm:$0xff]  ;;  %v2652_v59 = vld [vmem:[%s3907_s0 + $0xb0] sm:$0xff]  ;;  %v2825_v9 = vld [vmem:[%s3907_s0 + $0x88] sm:$0xff] }
  0x12   : > { %2024 = vmatprep.subr.mxu0 %v2508_v11  ;;  %v457_v41 = vsub.f32 %v2534_v21, %v3923_v32  ;;  %v3917_v42 = vand.u32 4294901760, %v2585_v34  ;;  %v2610_v43 = vsub.f32 %v155_v8, %v2510_v12  ;;  %v2613_v44 = vand.u32 4294901760, %v2577_v31  ;;  %v2667_v0 = vld [vmem:[%s3907_s0 + $0x30] sm:$0xff]  ;;  %v2683_v8 = vld [vmem:[%s3907_s0 + $0xa8] sm:$0xff]  ;;  %s2019_s24 = sshll.u32 %s4279_s10, 3  ;;  %s2016_s14 = sshll.u32 %s4279_s10, 2 }
  0x13   : > { %2025 = vmatpush3.msra.mxu0 %v2510_v12  ;;  %v345_v45 = vsub.f32 %v2556_v26, %v3921_v36  ;;  %v464_v46 = vsub.f32 %v2562_v28, %v3919_v37  ;;  %v3916_v47 = vand.u32 4294901760, %v2594_v38  ;;  %v2624_v48 = vsub.f32 %v170_v13, %v2526_v18  ;;  %v2798_v37 = vld [vmem:[%s3907_s0 + $0x90] sm:$0xff]  ;;  %s137_s27 = scalar_lea.vmem %s3908_s1, %s2019_s24  ;;  %s141_s17 = scalar_lea.vmem %s3909_s2, %s2016_s14 }
  0x14   : > { %4055 = vst [vmem:[#allocation3_spill] sm:$0xff] %v2613_v44  ;;  %2026 = vmatprep.subr.mxu0 %v2526_v18  ;;  %v458_v50 = vand.u32 4294901760, %v457_v41  ;;  %v352_v51 = vsub.f32 %v2585_v34, %v3917_v42  ;;  %v3914_v52 = vand.u32 4294901760, %v2610_v43  ;;  %v2637_v53 = vand.u32 4294901760, %v2602_v40  ;;  %v2697_v41 = vld [vmem:[%s3907_s0 + $0x28] sm:$0xff]  ;;  %v2776_v42 = vld [vmem:[%s3907_s0 + $0x18] sm:$0xff] }
  0x15   : > { %2027 = vmatpush3.msra.mxu0 %v2528_v19  ;;  %v346_v55 = vand.u32 4294901760, %v345_v45  ;;  %v465_v56 = vand.u32 4294901760, %v464_v46  ;;  %v471_v57 = vsub.f32 %v2594_v38, %v3916_v47  ;;  %v3913_v58 = vand.u32 4294901760, %v2624_v48  ;;  %v2811_v36 = vld [vmem:[%s3907_s0 + $0x10] sm:$0xff] }
  0x16   : > { %4056 = vst [vmem:[#allocation4_spill] sm:$0xff] %v2637_v53  ;;  %2028 = vmatprep.subr.mxu0 %v2531_v20  ;;  %2055 = vmatprep.subr.mxu1 %v458_v50  ;;  %v353_v60 = vand.u32 4294901760, %v352_v51  ;;  %v359_v61 = vsub.f32 %v2610_v43, %v3914_v52  ;;  %v2659_v62 = vsub.f32 %v154_v14, %v2528_v19  ;;  %v2662_v63 = vand.u32 4294901760, %v2629_v49 }
  0x17   : > { %2029 = vmatpush3.msra.mxu0 %v2553_v25  ;;  %2056 = vmatpush3.msra.mxu1 %v346_v55  ;;  %v472_v1 = vand.u32 4294901760, %v471_v57  ;;  %v478_v2 = vsub.f32 %v2624_v48, %v3913_v58  ;;  %v2675_v6 = vsub.f32 %v2521_v15, %v2531_v20  ;;  %v2678_v7 = vand.u32 4294901760, %v2642_v54 }
  0x18   : > { %4057 = vst [vmem:[#allocation5_spill] sm:$0xff] %v2662_v63  ;;  %2030 = vmatprep.subr.mxu0 %v2559_v27  ;;  %2057 = vmatprep.subr.mxu1 %v465_v56  ;;  %v360_v13 = vand.u32 4294901760, %v359_v61  ;;  %v3910_v14 = vand.u32 4294901760, %v2659_v62  ;;  %v2689_v16 = vsub.f32 %v2539_v22, %v2553_v25  ;;  %v2692_v15 = vand.u32 4294901760, %v2652_v59 }
  0x19   : > { %4058 = vst [vmem:[#allocation6_spill] sm:$0xff] %v2678_v7  ;;  %2031 = vmatpush3.msra.mxu0 %v2582_v33  ;;  %2058 = vmatpush3.msra.mxu1 %v353_v60  ;;  %v479_v45 = vand.u32 4294901760, %v478_v2  ;;  %v3911_v46 = vand.u32 4294901760, %v2675_v6  ;;  %v2703_v50 = vsub.f32 %v2544_v23, %v2559_v27  ;;  %v2706_v22 = vand.u32 4294901760, %v2667_v0  ;;  %v2723_v23 = vld [vmem:[%s3907_s0 + $0xa0] sm:$0xff] }
  0x1a   : > { %4059 = vst [vmem:[#allocation7_spill] sm:$0xff] %v2692_v15  ;;  %2032 = vmatprep.subr.mxu0 %v2588_v35  ;;  %2059 = vmatprep.subr.mxu1 %v472_v1  ;;  %v366_v51 = vsub.f32 %v2659_v62, %v3910_v14  ;;  %v3912_v55 = vand.u32 4294901760, %v2689_v16  ;;  %v2715_v56 = vsub.f32 %v2549_v24, %v2582_v33  ;;  %v2718_v57 = vand.u32 4294901760, %v2683_v8 }
  0x1b   : > { %4060 = vst [vmem:[#allocation8_spill] sm:$0xff] %v2706_v22  ;;  %2033 = vmatpush3.msra.mxu0 %v2597_v39  ;;  %2060 = vmatpush3.msra.mxu1 %v360_v13  ;;  %v485_v60 = vsub.f32 %v2675_v6, %v3911_v46  ;;  %v3915_v61 = vand.u32 4294901760, %v2703_v50  ;;  %v2732_v24 = vsub.f32 %v2567_v29, %v2588_v35  ;;  %v2735_v1 = vand.u32 4294901760, %v2697_v41  ;;  %v2749_v29 = vld [vmem:[%s3907_s0 + $0x20] sm:$0xff] }
  0x1c   : > { %4061 = vst [vmem:[#allocation9_spill] sm:$0xff] %v2718_v57  ;;  %2034 = vmatprep.subr.mxu0 %v2613_v44  ;;  %2061 = vmatprep.subr.mxu1 %v479_v45  ;;  %v367_v2 = vand.u32 4294901760, %v366_v51  ;;  %v373_v13 = vsub.f32 %v2689_v16, %v3912_v55  ;;  %v3918_v14 = vand.u32 4294901760, %v2715_v56  ;;  %v2744_v46 = vsub.f32 %v2572_v30, %v2597_v39  ;;  %v2762_v30 = vld [vmem:[%s3907_s0 + $0x98] sm:$0xff] }
  0x1d   : > { %4062 = vst [vmem:[#allocation10_spill] sm:$0xff] %v2735_v1  ;;  %2035 = vmatpush3.msra.mxu0 %v2637_v53  ;;  %v486_v45 = vand.u32 4294901760, %v485_v60  ;;  %v492_v51 = vsub.f32 %v2703_v50, %v3915_v61  ;;  %v3920_v55 = vand.u32 4294901760, %v2732_v24  ;;  %v2757_v58 = vand.u32 4294901760, %v2723_v23 }
  0x1e   : > { %2062 = vmatpush3.msra.mxu1 %v367_v2  ;;  %2036 = vmatprep.subr.mxu0 %v2662_v63  ;;  %v374_v52 = vand.u32 4294901760, %v373_v13  ;;  %v380_v60 = vsub.f32 %v2715_v56, %v3918_v14  ;;  %v3922_v61 = vand.u32 4294901760, %v2744_v46  ;;  %v2771_v47 = vsub.f32 %v2577_v31, %v2613_v44 }
  0x1f   : > { %4063 = vst [vmem:[#allocation11_spill] sm:$0xff] %v2757_v58  ;;  %2063 = vmatprep.subr.mxu1 %v486_v45  ;;  %2037 = vmatpush3.msra.mxu0 %v2678_v7  ;;  %v493_v2 = vand.u32 4294901760, %v492_v51  ;;  %v499_v13 = vsub.f32 %v2732_v24, %v3920_v55  ;;  %v2789_v31 = vand.u32 4294901760, %v2749_v29  ;;  %v2793_v14 = vsub.f32 %v2602_v40, %v2637_v53 }
  0x20   : > { %2064 = vmatpush3.msra.mxu1 %v374_v52  ;;  %2038 = vmatprep.subr.mxu0 %v2692_v15  ;;  %v381_v45 = vand.u32 4294901760, %v380_v60  ;;  %v387_v51 = vsub.f32 %v2744_v46, %v3922_v61  ;;  %v3924_v55 = vand.u32 4294901760, %v2771_v47  ;;  %v2806_v40 = vand.u32 4294901760, %v2762_v30 }
  0x21   : > { %4065 = vst [vmem:[#allocation12_spill] sm:$0xff] %v2789_v31  ;;  %4066 = vst [vmem:[#allocation13_spill] sm:$0xff] %v2793_v14  ;;  %2065 = vmatprep.subr.mxu1 %v493_v2  ;;  %2039 = vmatpush3.msra.mxu0 %v2706_v22  ;;  %v500_v52 = vand.u32 4294901760, %v499_v13  ;;  %v2817_v61 = vsub.f32 %v2629_v49, %v2662_v63  ;;  %v2820_v32 = vand.u32 4294901760, %v2776_v42  ;;  %v2836_v60 = vand.u32 4294901760, %v2798_v37  ;;  %v2859_v63 = vld [vmem:[%s3907_s0 + $0x8] sm:$0xff] }
  0x22   : > { %4067 = vst [vmem:[#allocation14_spill] sm:$0xff] %v2806_v40  ;;  %2066 = vmatpush3.msra.mxu1 %v381_v45  ;;  %2040 = vmatprep.subr.mxu0 %v2718_v57  ;;  %v388_v2 = vand.u32 4294901760, %v387_v51  ;;  %v506_v13 = vsub.f32 %v2771_v47, %v3924_v55  ;;  %v2833_v49 = vsub.f32 %v2642_v54, %v2678_v7  ;;  %v4071_v45 = vand.u32 4294901760, %v2793_v14 }
  0x23   : > { %4068 = vst [vmem:[#allocation15_spill] sm:$0xff] %v2820_v32  ;;  %4070 = vst [vmem:[#allocation17_spill] sm:$0xff] %v2836_v60  ;;  %2067 = vmatprep.subr.mxu1 %v500_v52  ;;  %2041 = vmatpush3.msra.mxu0 %v2735_v1  ;;  %v2851_v54 = vsub.f32 %v2652_v59, %v2692_v15  ;;  %v2854_v7 = vand.u32 4294901760, %v2811_v36  ;;  %v2865_v55 = vsub.f32 %v2667_v0, %v2706_v22  ;;  %v2873_v15 = vld [vmem:[%s3907_s0 + $0x80] sm:$0xff]  ;;  %vm1953_vm0 = vcmask 1041408  }
  0x24   : > { %4069 = vst [vmem:[#allocation16_spill] sm:$0xff] %v2833_v49  ;;  %v394_v51 = vsub.f32 %v2793_v14, %v4071_v45  ;;  %2068 = vmatpush3.msra.mxu1 %v388_v2  ;;  %2042 = vmatprep.subr.mxu0 %v2757_v58  ;;  %v507_v52 = vand.u32 4294901760, %v506_v13  ;;  %v2868_v59 = vand.u32 4294901760, %v2825_v9  ;;  %v4075_v13 = vand.u32 4294901760, %v2817_v61 }
  0x25   : > { %4072 = vst [vmem:[#allocation18_spill] sm:$0xff] %v2851_v54  ;;  %4073 = vst [vmem:[#allocation19_spill] sm:$0xff] %v2854_v7  ;;  %2043 = vmatpush3.msra.mxu0 %v2789_v31  ;;  %v3945_v53 = vand.u32 4294901760, %v2851_v54  ;;  %v2882_v0 = vsub.f32 %v2683_v8, %v2718_v57  ;;  %v4077_v22 = vand.u32 4294901760, %v2833_v49  ;;  %v2899_v8 = vld [vmem:[%s3907_s0] sm:$0xff]  ;;  %v2908_v57 = vand.u32 4294901760, %v2873_v15 }
  0x26   : > { %4074 = vst [vmem:[#allocation20_spill] sm:$0xff] %v2868_v59  ;;  %v395_v2 = vand.u32 4294901760, %v394_v51  ;;  %v513_v45 = vsub.f32 %v2817_v61, %v4075_v13  ;;  %2069 = vmatprep.subr.mxu1 %v507_v52  ;;  %2044 = vmatprep.subr.mxu0 %v2806_v40  ;;  %v2890_v51 = vand.u32 4294901760, %v2859_v63  ;;  %v2894_v13 = vsub.f32 %v2697_v41, %v2735_v1 }
  0x27   : > { %4076 = vst [vmem:[#allocation21_spill] sm:$0xff] %v2882_v0  ;;  %v401_v44 = vsub.f32 %v2833_v49, %v4077_v22  ;;  %2045 = vmatpush3.msra.mxu0 %v2820_v32  ;;  %v520_v22 = vsub.f32 %v2851_v54, %v3945_v53  ;;  %v3948_v14 = vand.u32 4294901760, %v2882_v0  ;;  %v4079_v1 = vand.u32 4294901760, %v2865_v55 }
  0x28   : > { %4078 = vst [vmem:[#allocation22_spill] sm:$0xff] %v2890_v51  ;;  %2070 = vmatpush3.msra.mxu1 %v395_v2  ;;  %v514_v52 = vand.u32 4294901760, %v513_v45  ;;  %2046 = vmatprep.subr.mxu0 %v2836_v60  ;;  %v3955_v45 = vand.u32 4294901760, %v2894_v13  ;;  %v2917_v2 = vsub.f32 %v2723_v23, %v2757_v58  ;;  %v2924_v54 = vand.u32 4294901760, %v2899_v8 }
  0x29   : > { %v402_v41 = vand.u32 4294901760, %v401_v44  ;;  %v408_v49 = vsub.f32 %v2865_v55, %v4079_v1  ;;  %v521_v53 = vand.u32 4294901760, %v520_v22  ;;  %2047 = vmatpush3.msra.mxu0 %v2854_v7  ;;  %v527_v44 = vsub.f32 %v2882_v0, %v3948_v14 }
  0x2a   : > { %2071 = vmatprep.subr.mxu1 %v514_v52  ;;  %4080 = vst [vmem:[#allocation23_spill] sm:$0xff] %v2924_v54  ;;  %v2928_v1 = vsub.f32 %v2749_v29, %v2789_v31  ;;  %2048 = vmatprep.subr.mxu0 %v2868_v59  ;;  %v415_v52 = vsub.f32 %v2894_v13, %v3955_v45  ;;  %v3956_v22 = vand.u32 4294901760, %v2917_v2  ;;  %v211_v31 = vunpack.c.0.s8 %v2523_v17  ;;  %v2946_v45 = vld [vmem:[%s137_s27] sm:$0xff] }
  0x2b   : > { %2072 = vmatpush3.msra.mxu1 %v402_v41  ;;  %v409_v23 = vand.u32 4294901760, %v408_v49  ;;  %v528_v14 = vand.u32 4294901760, %v527_v44  ;;  %2049 = vmatpush3.msra.mxu0 %v2890_v51  ;;  %v4081_v58 = vlaneseq  ;;  %v2954_v44 = vsub.f32 %v2776_v42, %v2820_v32 }
  0x2c   : > { %2073 = vmatprep.subr.mxu1 %v521_v53  ;;  %v3957_v29 = vand.u32 4294901760, %v2928_v1  ;;  %v416_v49 = vand.u32 4294901760, %v415_v52  ;;  %2050 = vmatprep.subr.mxu0 %v2908_v57  ;;  %v534_v41 = vsub.f32 %v2917_v2, %v3956_v22  ;;  %v2950_v53 = vsub.f32 %v2762_v30, %v2806_v40 }
  0x2d   : > { %v213_v0 = vshrl.u32 %v4081_v58, 7  ;;  %2074 = vmatpush3.msra.mxu1 %v409_v23  ;;  %2051 = vmatpush3.msra.mxu0 %v2924_v54  ;;  %v2964_v23 = vsub.f32 %v2798_v37, %v2836_v60  ;;  %v3962_v42 = vand.u32 4294901760, %v2954_v44  ;;  %v2978_v37 = vsub.f32 %v2825_v9, %v2868_v59 }
  0x2e   : > { %2075 = vmatprep.subr.mxu1 %v528_v14  ;;  %v422_v17 = vsub.f32 %v2928_v1, %v3957_v29  ;;  %v535_v30 = vand.u32 4294901760, %v534_v41  ;;  %v3958_v52 = vand.u32 4294901760, %v2950_v53  ;;  %2090 = vmatprep.subr.mxu0 %v2534_v21  ;;  %v2971_v14 = vsub.f32 %v2811_v36, %v2854_v7 }
  0x2f   : > { %v2960_v58 = vsub.s32 %v211_v31, %v213_v0  ;;  %2076 = vmatpush3.msra.mxu1 %v416_v49  ;;  %v429_v36 = vsub.f32 %v2954_v44, %v3962_v42  ;;  %v4083_v9 = vand.u32 4294901760, %v2964_v23 }
  0x30   : > { %v423_v22 = vand.u32 4294901760, %v422_v17  ;;  %2077 = vmatprep.subr.mxu1 %v535_v30  ;;  %v541_v49 = vsub.f32 %v2950_v53, %v3958_v52  ;;  %v3969_v41 = vand.u32 4294901760, %v2971_v14  ;;  %v2989_v17 = vsub.f32 %v2859_v63, %v2890_v51 }
  0x31   : > { %v215_v31 = vrot.slane %v2946_v45, %v2960_v58  ;;  %v548_v30 = vsub.f32 %v2964_v23, %v4083_v9  ;;  %v3971_v52 = vand.u32 4294901760, %v2978_v37  ;;  %v430_v59 = vand.u32 4294901760, %v429_v36 }
  0x32   : > { %2078 = vmatpush3.msra.mxu1 %v423_v22  ;;  %v542_v21 = vand.u32 4294901760, %v541_v49  ;;  %v436_v42 = vsub.f32 %v2971_v14, %v3969_v41  ;;  %v3970_v7 = vand.u32 4294901760, %v2989_v17  ;;  %v3014_v36 = vsub.f32 %v2873_v15, %v2908_v57 }
  0x33   : > { %v223_v29 = vcombine.high %v215_v31, %v215_v31  ;;  %v2991_v0 = vand.u32 4294901760, %v215_v31  ;;  %v549_v51 = vand.u32 4294901760, %v548_v30  ;;  %v555_v9 = vsub.f32 %v2978_v37, %v3971_v52 }
  0x34   : > { %2079 = vmatprep.subr.mxu1 %v542_v21  ;;  %v437_v60 = vand.u32 4294901760, %v436_v42  ;;  %v443_v49 = vsub.f32 %v2989_v17, %v3970_v7  ;;  %v3018_v41 = vsub.f32 %v2899_v8, %v2924_v54  ;;  %v3977_v7 = vand.u32 4294901760, %v3014_v36 }
  0x35   : > { %4082 = vst [vmem:[#allocation24_spill] sm:$0xff] %v2991_v0  ;;  %v3001_v63 = vand.u32 4294901760, %v223_v29  ;;  %v3004_v22 = vsub.f32 %v215_v31, %v2991_v0  ;;  %2080 = vmatpush3.msra.mxu1 %v430_v59  ;;  %v556_v21 = vand.u32 4294901760, %v555_v9 }
  0x36   : > { %4085 = vst [vmem:[#allocation26_spill] sm:$0xff] %v3018_v41  ;;  %2081 = vmatprep.subr.mxu1 %v549_v51  ;;  %v444_v42 = vand.u32 4294901760, %v443_v49  ;;  %v3976_v15 = vand.u32 4294901760, %v3018_v41  ;;  %v562_v59 = vsub.f32 %v3014_v36, %v3977_v7  ;;  %v4097_v7 = vld [vmem:[#allocation10_spill] sm:$0xff] }
  0x37   : > { %4084 = vst [vmem:[#allocation25_spill] sm:$0xff] %v3001_v63  ;;  %v3021_v31 = vsub.f32 %v223_v29, %v3001_v63  ;;  %v3978_v30 = vand.u32 4294901760, %v3004_v22  ;;  %566 = vmatprep.mubr.f32.mxu1 %v3001_v63  ;;  %2082 = vmatpush3.msra.mxu1 %v437_v60  ;;  %v4086_v60 = vld [vmem:[#allocation13_spill] sm:$0xff] }
  0x38   : > { %2083 = vmatprep.subr.mxu1 %v556_v21  ;;  %v450_v51 = vsub.f32 %v3018_v41, %v3976_v15  ;;  %v563_v49 = vand.u32 4294901760, %v562_v59  ;;  %v4089_v21 = vld [vmem:[#allocation16_spill] sm:$0xff]  ;;  %v4092_v59 = vld [vmem:[#allocation6_spill] sm:$0xff]  ;;  %v4096_v15 = vld [vmem:[#allocation9_spill] sm:$0xff] }
  0x39   : > { %v3979_v52 = vand.u32 4294901760, %v3021_v31  ;;  %v334_v8 = vsub.f32 %v3004_v22, %v3978_v30  ;;  %2084 = vmatpush3.msra.mxu1 %v444_v42  ;;  %v4090_v42 = vld [vmem:[#allocation5_spill] sm:$0xff]  ;;  %v4098_v30 = vld [vmem:[#allocation11_spill] sm:$0xff] }
  0x3a   : > { %v451_v63 = vand.u32 4294901760, %v450_v51  ;;  %2085 = vmatprep.subr.mxu1 %v563_v49  ;;  %v4093_v51 = vld [vmem:[#allocation7_spill] sm:$0xff]  ;;  %v208_v49 = vcombine.high %v2946_v45, %v2946_v45 }
  0x3b   : > { %v328_v29 = vsub.f32 %v3021_v31, %v3979_v52  ;;  %v335_v9 = vand.u32 4294901760, %v334_v8  ;;  %v4091_v8 = vld [vmem:[#allocation18_spill] sm:$0xff]  ;;  %v4099_v52 = vld [vmem:[#allocation12_spill] sm:$0xff] }
  0x3c   : > { %2086 = vmatpush3.msra.mxu1 %v451_v63  ;;  %v4088_v63 = vld [vmem:[#allocation4_spill] sm:$0xff]  ;;  %v3094_v45 = vrot.slane %v208_v49, %v2960_v58  ;;  %v4104_v49 = vld [vmem:[#allocation22_spill] sm:$0xff] }
  0x3d   : > { %v329_v54 = vand.u32 4294901760, %v328_v29  ;;  %568 = vmatmul.mubr.f32.vlgmr.msra.gmra.mxu1 %v2991_v0  ;;  %2125 = vmatprep.subr.mxu1 %v2491_v3  ;;  %v4094_v29 = vld [vmem:[#allocation21_spill] sm:$0xff]  ;;  %v4103_v58 = vld [vmem:[#allocation20_spill] sm:$0xff] }
  0x3e   : > { %2126 = vmatpush3.msra.mxu1 %v2493_v4  ;;  %4100 = vst [vmem:[#allocation13_spill] sm:$0xff] %v3094_v45  ;;  %v4101_v0 = vld [vmem:[#allocation17_spill] sm:$0xff]  ;;  %v4105_v45 = vld [vmem:[#allocation2_spill] sm:$0xff] }
  0x3f   : > { %330 = vmatprep.mubr.f32.mxu0 %v329_v54  ;;  %2127 = vmatprep.subr.mxu1 %v2495_v5  ;;  %v4087_v54 = vld [vmem:[#allocation3_spill] sm:$0xff] }
  0x40   : > { %336 = vmatmul.mubr.f32.vlgmr.msra.gmra.mxu0 %v335_v9  ;;  %2128 = vmatpush3.msra.mxu1 %v2506_v10  ;;  %v4095_v9 = vld [vmem:[#allocation8_spill] sm:$0xff] }
  0x41   : > { %2091 = vmatpush3.msra.mxu0 %v2556_v26  ;;  %2129 = vmatprep.subr.mxu1 %v2508_v11 }
  0x42   : > { %2092 = vmatprep.subr.mxu0 %v2562_v28  ;;  %2130 = vmatpush3.msra.mxu1 %v2510_v12 }
  0x43   : > { %2093 = vmatpush3.msra.mxu0 %v2585_v34  ;;  %2131 = vmatprep.subr.mxu1 %v2526_v18 }
  0x44   : > { %2094 = vmatprep.subr.mxu0 %v2594_v38  ;;  %2132 = vmatpush3.msra.mxu1 %v2528_v19 }
  0x45   : > { %2095 = vmatpush3.msra.mxu0 %v2610_v43  ;;  %2133 = vmatprep.subr.mxu1 %v2531_v20 }
  0x46   : > { %2096 = vmatprep.subr.mxu0 %v2624_v48  ;;  %2134 = vmatpush3.msra.mxu1 %v2553_v25 }
  0x47   : > { %2097 = vmatpush3.msra.mxu0 %v2659_v62  ;;  %2135 = vmatprep.subr.mxu1 %v2559_v27 }
  0x48   : > { %2098 = vmatprep.subr.mxu0 %v2675_v6  ;;  %2136 = vmatpush3.msra.mxu1 %v2582_v33 }
  0x49   : > { %2099 = vmatpush3.msra.mxu0 %v2689_v16  ;;  %2137 = vmatprep.subr.mxu1 %v2588_v35 }
  0x4a   : > { %2100 = vmatprep.subr.mxu0 %v2703_v50  ;;  %2138 = vmatpush3.msra.mxu1 %v2597_v39 }
  0x4b   : > { %2101 = vmatpush3.msra.mxu0 %v2715_v56  ;;  %2139 = vmatprep.subr.mxu1 %v4087_v54 }
  0x4c   : > { %2102 = vmatprep.subr.mxu0 %v2732_v24  ;;  %2140 = vmatpush3.msra.mxu1 %v4088_v63 }
  0x4d   : > { %2103 = vmatpush3.msra.mxu0 %v2744_v46  ;;  %2141 = vmatprep.subr.mxu1 %v4090_v42 }
  0x4e   : > { %2104 = vmatprep.subr.mxu0 %v2771_v47  ;;  %2142 = vmatpush3.msra.mxu1 %v4092_v59 }
  0x4f   : > { %2105 = vmatpush3.msra.mxu0 %v4086_v60  ;;  %2143 = vmatprep.subr.mxu1 %v4093_v51 }
  0x50   : > { %2106 = vmatprep.subr.mxu0 %v2817_v61  ;;  %2144 = vmatpush3.msra.mxu1 %v4095_v9 }
  0x51   : > { %2107 = vmatpush3.msra.mxu0 %v4089_v21  ;;  %2145 = vmatprep.subr.mxu1 %v4096_v15 }
  0x52   : > { %2108 = vmatprep.subr.mxu0 %v4091_v8  ;;  %2146 = vmatpush3.msra.mxu1 %v4097_v7 }
  0x53   : > { %2109 = vmatpush3.msra.mxu0 %v2865_v55  ;;  %2147 = vmatprep.subr.mxu1 %v4098_v30  ;;  %v4102_v30 = vld [vmem:[#allocation19_spill] sm:$0xff] }
  0x54   : > { %2110 = vmatprep.subr.mxu0 %v4094_v29  ;;  %703 = vmatprep.mubr.f32.mxu0 %v3021_v31 }
  0x55   : > { %2111 = vmatpush3.msra.mxu0 %v2894_v13  ;;  %2148 = vmatpush3.msra.mxu1 %v4099_v52 }
  0x56   : > { %2112 = vmatprep.subr.mxu0 %v2917_v2  ;;  %2149 = vmatprep.subr.mxu1 %v2806_v40  ;;  %v4107_v40 = vand.u32 4294901760, %v2556_v26  ;;  %v4114_v26 = vand.u32 4294901760, %v2610_v43  ;;  %v4118_v43 = vand.u32 4294901760, %v2689_v16  ;;  %v4125_v16 = vand.u32 4294901760, %v2817_v61  ;;  %v202_v61 = vld [vmem:[%s3907_s0 + $0x1e0] sm:$0xff] }
  0x57   : > { %2113 = vmatpush3.msra.mxu0 %v2928_v1  ;;  %2150 = vmatpush3.msra.mxu1 %v2820_v32  ;;  %v4106_v32 = vand.u32 4294901760, %v4105_v45 }
  0x58   : > { %2114 = vmatprep.subr.mxu0 %v2950_v53  ;;  %2151 = vmatprep.subr.mxu1 %v4101_v0  ;;  %v4109_v0 = vld [vmem:[#allocation23_spill] sm:$0xff] }
  0x59   : > { %2115 = vmatpush3.msra.mxu0 %v2954_v44  ;;  %2152 = vmatpush3.msra.mxu1 %v4102_v30  ;;  %v4108_v30 = vand.u32 4294901760, %v2562_v28  ;;  %v4115_v28 = vand.u32 4294901760, %v2624_v48  ;;  %v4123_v48 = vand.u32 4294901760, %v2771_v47 }
  0x5a   : > { %2116 = vmatprep.subr.mxu0 %v2964_v23  ;;  %2153 = vmatprep.subr.mxu1 %v4103_v58  ;;  %v4110_v58 = vand.u32 4294901760, %v2585_v34  ;;  %v4116_v34 = vand.u32 4294901760, %v2659_v62 }
  0x5b   : > { %2117 = vmatpush3.msra.mxu0 %v2971_v14  ;;  %2154 = vmatpush3.msra.mxu1 %v4104_v49  ;;  %v4111_v49 = vand.u32 4294901760, %v3021_v31  ;;  %v4131_v31 = vand.u32 4294901760, %v4094_v29  ;;  %v4137_v29 = vand.u32 4294901760, %v2928_v1  ;;  %v4138_v1 = vand.u32 4294901760, %v2950_v53  ;;  %v183_v53 = vld [vmem:[%s3907_s0 + $0x148] sm:$0xff] }
  0x5c   : > { %2118 = vmatprep.subr.mxu0 %v2978_v37  ;;  %2155 = vmatprep.subr.mxu1 %v2908_v57 }
  0x5d   : > { %2119 = vmatpush3.msra.mxu0 %v2989_v17  ;;  %2156 = vmatpush3.msra.mxu1 %v4109_v0 }
  0x5e   : > { %2120 = vmatprep.subr.mxu0 %v3014_v36  ;;  %810 = vmatprep.mubr.f32.mxu1 %v4111_v49 }
  0x5f   : > { %2121 = vmatpush3.msra.mxu0 %v3018_v41  ;;  %v4112_v41 = vand.u32 4294901760, %v2594_v38  ;;  %2195 = vmatprep.subr.mxu1 %v2491_v3  ;;  %v4117_v38 = vand.u32 4294901760, %v2675_v6  ;;  %v4119_v3 = vand.u32 4294901760, %v2703_v50  ;;  %v4124_v6 = vand.u32 4294901760, %v4086_v60 }
  0x60   : > { %706 = vmatmul.mubr.f32.vlgmr.msra.gmra.mxu0 %v3004_v22  ;;  %2160 = vmatprep.subr.mxu0 %v4106_v32  ;;  %v4113_v32 = vand.u32 4294901760, %v3004_v22  ;;  %v4126_v50 = vand.u32 4294901760, %v4089_v21  ;;  %v3224_v60 = vand.u32 4294901760, %v202_v61  ;;  %v185_v21 = vld [vmem:[%s3907_s0 + $0x158] sm:$0xff] }
  0x61   : > { %2161 = vmatpush3.msra.mxu0 %v4107_v40 }
  0x62   : > { %2162 = vmatprep.subr.mxu0 %v4108_v30  ;;  %814 = vmatmul.mubr.f32.vlgmr.msra.gmra.mxu1 %v4113_v32  ;;  %v4132_v30 = vand.u32 4294901760, %v2894_v13  ;;  %4133 = vst [vmem:[#allocation16_spill] sm:$0xff] %v3224_v60 }
  0x63   : > { %2163 = vmatpush3.msra.mxu0 %v4110_v58  ;;  %2196 = vmatpush3.msra.mxu1 %v2493_v4  ;;  %v4120_v4 = vand.u32 4294901760, %v2715_v56  ;;  %v4127_v56 = vand.u32 4294901760, %v4091_v8 }
  0x64   : > { %2164 = vmatprep.subr.mxu0 %v4112_v41  ;;  %2197 = vmatprep.subr.mxu1 %v2495_v5  ;;  %v189_v5 = vld [vmem:[%s3907_s0 + $0x178] sm:$0xff] }
  0x65   : > { %2165 = vmatpush3.msra.mxu0 %v4114_v26  ;;  %2198 = vmatpush3.msra.mxu1 %v2506_v10  ;;  %v4121_v10 = vand.u32 4294901760, %v2732_v24  ;;  %v3164_v62 = vand.u32 4294901760, %v189_v5  ;;  %v186_v24 = vld [vmem:[%s3907_s0 + $0x160] sm:$0xff]  ;;  %v4140_v26 = vand.u32 4294901760, %v2954_v44 }
  0x66   : > { %2166 = vmatprep.subr.mxu0 %v4115_v28  ;;  %2199 = vmatprep.subr.mxu1 %v2508_v11  ;;  %v205_v11 = vld [vmem:[%s3907_s0 + $0x1f8] sm:$0xff] }
  0x67   : > { %2167 = vmatpush3.msra.mxu0 %v4116_v34  ;;  %2200 = vmatpush3.msra.mxu1 %v2510_v12  ;;  %v4122_v12 = vand.u32 4294901760, %v2744_v46  ;;  %v187_v46 = vld [vmem:[%s3907_s0 + $0x168] sm:$0xff] }
  0x68   : > { %2168 = vmatprep.subr.mxu0 %v4117_v38  ;;  %2201 = vmatprep.subr.mxu1 %v2526_v18  ;;  %v188_v18 = vld [vmem:[%s3907_s0 + $0x170] sm:$0xff]  ;;  %v3207_v41 = vand.u32 4294901760, %v187_v46  ;;  %v4141_v38 = vand.u32 4294901760, %v2964_v23  ;;  %v4144_v23 = vand.u32 4294901760, %v2971_v14 }
  0x69   : > { %2169 = vmatpush3.msra.mxu0 %v4118_v43  ;;  %2202 = vmatpush3.msra.mxu1 %v2528_v19  ;;  %v204_v19 = vld [vmem:[%s3907_s0 + $0x1f0] sm:$0xff]  ;;  %v3177_v47 = vand.u32 4294901760, %v188_v18 }
  0x6a   : > { %2170 = vmatprep.subr.mxu0 %v4119_v3  ;;  %2203 = vmatprep.subr.mxu1 %v2531_v20  ;;  %v3172_v20 = vand.u32 4294901760, %v205_v11  ;;  %4130 = vst [vmem:[#allocation4_spill] sm:$0xff] %v3207_v41  ;;  %v3244_v45 = vsub.f32 %v187_v46, %v3207_v41  ;;  %v199_v3 = vld [vmem:[%s3907_s0 + $0x1c8] sm:$0xff] }
  0x6b   : > { %2171 = vmatpush3.msra.mxu0 %v4120_v4  ;;  %2204 = vmatpush3.msra.mxu1 %v2553_v25  ;;  %v203_v25 = vld [vmem:[%s3907_s0 + $0x1e8] sm:$0xff] }
  0x6c   : > { %2172 = vmatprep.subr.mxu0 %v4121_v10  ;;  %2205 = vmatprep.subr.mxu1 %v2559_v27  ;;  %v3188_v27 = vand.u32 4294901760, %v204_v19  ;;  %v3205_v40 = vand.u32 4294901760, %v203_v25  ;;  %v3213_v22 = vsub.f32 %v205_v11, %v3172_v20  ;;  %v3988_v11 = vand.u32 4294901760, %v3244_v45 }
  0x6d   : > { %2173 = vmatpush3.msra.mxu0 %v4122_v12  ;;  %2206 = vmatpush3.msra.mxu1 %v2582_v33  ;;  %v3194_v33 = vsub.f32 %v189_v5, %v3164_v62  ;;  %v4146_v12 = vand.u32 4294901760, %v2978_v37 }
  0x6e   : > { %2174 = vmatprep.subr.mxu0 %v4123_v48  ;;  %2207 = vmatprep.subr.mxu1 %v2588_v35  ;;  %v4128_v35 = vand.u32 4294901760, %v2865_v55  ;;  %4129 = vst [vmem:[#allocation3_spill] sm:$0xff] %v3205_v40  ;;  %v3219_v55 = vsub.f32 %v188_v18, %v3177_v47  ;;  %v3232_v8 = vsub.f32 %v204_v19, %v3188_v27  ;;  %v3994_v58 = vand.u32 4294901760, %v3213_v22  ;;  %v4147_v18 = vld [vmem:[#allocation25_spill] sm:$0xff] }
  0x6f   : > { %2175 = vmatpush3.msra.mxu0 %v4124_v6  ;;  %2208 = vmatpush3.msra.mxu1 %v2597_v39  ;;  %v201_v39 = vld [vmem:[%s3907_s0 + $0x1d8] sm:$0xff]  ;;  %v3254_v49 = vsub.f32 %v203_v25, %v3205_v40  ;;  %v3314_v19 = vand.u32 4294901760, %v183_v53  ;;  %v198_v6 = vld [vmem:[%s3907_s0 + $0x1c0] sm:$0xff]  ;;  %v3327_v25 = vand.u32 4294901760, %v199_v3 }
  0x70   : > { %2176 = vmatprep.subr.mxu0 %v4125_v16  ;;  %2209 = vmatprep.subr.mxu1 %v4087_v54  ;;  %v3226_v54 = vand.u32 4294901760, %v186_v24  ;;  %v3237_v13 = vand.u32 4294901760, %v201_v39  ;;  %v3990_v32 = vand.u32 4294901760, %v3219_v55  ;;  %v3991_v34 = vand.u32 4294901760, %v3232_v8 }
  0x71   : > { %2177 = vmatpush3.msra.mxu0 %v4126_v50  ;;  %2210 = vmatpush3.msra.mxu1 %v4088_v63  ;;  %v4135_v63 = vand.u32 4294901760, %v2917_v2  ;;  %v200_v2 = vld [vmem:[%s3907_s0 + $0x1d0] sm:$0xff]  ;;  %v3299_v5 = vsub.f32 %v3213_v22, %v3994_v58  ;;  %v3989_v10 = vand.u32 4294901760, %v3254_v49  ;;  %4148 = vst [vmem:[#allocation8_spill] sm:$0xff] %v3314_v19  ;;  %v4149_v16 = vand.u32 4294901760, %v2989_v17  ;;  %4150 = vst [vmem:[#allocation9_spill] sm:$0xff] %v3327_v25 }
  0x72   : > { %2178 = vmatprep.subr.mxu0 %v4127_v56  ;;  %2211 = vmatprep.subr.mxu1 %v4090_v42  ;;  %4134 = vst [vmem:[#allocation5_spill] sm:$0xff] %v3226_v54  ;;  %4136 = vst [vmem:[#allocation18_spill] sm:$0xff] %v3237_v13  ;;  %v3993_v42 = vand.u32 4294901760, %v3194_v33  ;;  %v3266_v28 = vsub.f32 %v186_v24, %v3226_v54  ;;  %v3291_v4 = vsub.f32 %v201_v39, %v3237_v13  ;;  %v182_v50 = vld [vmem:[%s3907_s0 + $0x140] sm:$0xff]  ;;  %v181_v17 = vld [vmem:[%s3907_s0 + $0x138] sm:$0xff] }
  0x73   : > { %2179 = vmatpush3.msra.mxu0 %v4128_v35  ;;  %2212 = vmatpush3.msra.mxu1 %v4092_v59  ;;  %v184_v59 = vld [vmem:[%s3907_s0 + $0x150] sm:$0xff]  ;;  %v3312_v14 = vsub.f32 %v3219_v55, %v3990_v32  ;;  %v3325_v37 = vsub.f32 %v3232_v8, %v3991_v34 }
  0x74   : > { %2180 = vmatprep.subr.mxu0 %v4131_v31  ;;  %2213 = vmatprep.subr.mxu1 %v4093_v51  ;;  %v3259_v51 = vand.u32 4294901760, %v185_v21  ;;  %v3281_v44 = vsub.f32 %v3194_v33, %v3993_v42  ;;  %v3285_v43 = vand.u32 4294901760, %v184_v59  ;;  %v3987_v56 = vand.u32 4294901760, %v3266_v28  ;;  %v4164_v32 = vld [vmem:[#allocation20_spill] sm:$0xff]  ;;  %v3418_v42 = vld [vmem:[%s3907_s0 + $0x1a8] sm:$0xff] }
  0x75   : > { %2181 = vmatpush3.msra.mxu0 %v4132_v30  ;;  %2214 = vmatpush3.msra.mxu1 %v4095_v9  ;;  %v3273_v9 = vsub.f32 %v202_v61, %v3224_v60  ;;  %v4152_v61 = vld [vmem:[#allocation14_spill] sm:$0xff]  ;;  %v3992_v39 = vand.u32 4294901760, %v3291_v4 }
  0x76   : > { %2182 = vmatprep.subr.mxu0 %v4135_v63  ;;  %4139 = vst [vmem:[#allocation6_spill] sm:$0xff] %v3259_v51  ;;  %2215 = vmatprep.subr.mxu1 %v4096_v15  ;;  %v3283_v15 = vand.u32 4294901760, %v200_v2  ;;  %4143 = vst [vmem:[#allocation21_spill] sm:$0xff] %v3285_v43  ;;  %v3307_v48 = vsub.f32 %v185_v21, %v3259_v51  ;;  %v3342_v35 = vsub.f32 %v184_v59, %v3285_v43  ;;  %v4153_v30 = vld [vmem:[#allocation26_spill] sm:$0xff]  ;;  %v4155_v63 = vld [vmem:[#allocation15_spill] sm:$0xff] }
  0x77   : > { %2183 = vmatpush3.msra.mxu0 %v4137_v29  ;;  %2216 = vmatpush3.msra.mxu1 %v4097_v7  ;;  %v4145_v7 = vld [vmem:[#allocation11_spill] sm:$0xff]  ;;  %v3986_v46 = vand.u32 4294901760, %v3273_v9  ;;  %v4154_v21 = vand.u32 4294901760, %v4153_v30  ;;  %v3355_v29 = vsub.f32 %v3254_v49, %v3989_v10  ;;  %v3360_v59 = vsub.f32 %v3244_v45, %v3988_v11  ;;  %v180_v11 = vld [vmem:[%s3907_s0 + $0x130] sm:$0xff] }
  0x78   : > { %2184 = vmatprep.subr.mxu0 %v4138_v1  ;;  %4142 = vst [vmem:[#allocation7_spill] sm:$0xff] %v3283_v15  ;;  %2217 = vmatprep.subr.mxu1 %v4145_v7  ;;  %v3346_v31 = vsub.f32 %v200_v2, %v3283_v15  ;;  %v3362_v1 = vand.u32 4294901760, %v198_v6  ;;  %v197_v2 = vld [vmem:[%s3907_s0 + $0x1b8] sm:$0xff]  ;;  %v3373_v7 = vand.u32 4294901760, %v182_v50  ;;  %v3995_v30 = vand.u32 4294901760, %v3307_v48 }
  0x79   : > { %2185 = vmatpush3.msra.mxu0 %v4140_v26  ;;  %980 = vmatprep.mubr.f32.mxu0 %v4147_v18  ;;  %v4157_v26 = vld [vmem:[#allocation24_spill] sm:$0xff]  ;;  %v3408_v10 = vsub.f32 %v199_v3, %v3327_v25  ;;  %v4166_v3 = vld [vmem:[#allocation22_spill] sm:$0xff]  ;;  %v3449_v24 = vand.u32 4294901760, %v180_v11 }
  0x7a   : > { %2186 = vmatprep.subr.mxu0 %v4141_v38  ;;  %2218 = vmatpush3.msra.mxu1 %v4099_v52  ;;  %v4151_v52 = vand.u32 4294901760, %v3014_v36  ;;  %4156 = vst [vmem:[#allocation10_spill] sm:$0xff] %v3362_v1  ;;  %4159 = vst [vmem:[#allocation2_spill] sm:$0xff] %v3373_v7  ;;  %v3421_v58 = vsub.f32 %v198_v6, %v3362_v1  ;;  %v179_v38 = vld [vmem:[%s3907_s0 + $0x128] sm:$0xff]  ;;  %v178_v6 = vld [vmem:[%s3907_s0 + $0x120] sm:$0xff] }
  0x7b   : > { %2187 = vmatpush3.msra.mxu0 %v4144_v23  ;;  %2219 = vmatprep.subr.mxu1 %v4152_v61  ;;  %v3371_v23 = vsub.f32 %v183_v53, %v3314_v19  ;;  %v3383_v61 = vsub.f32 %v3273_v9, %v3986_v46  ;;  %v3388_v53 = vsub.f32 %v3266_v28, %v3987_v56  ;;  %v3996_v56 = vand.u32 4294901760, %v3346_v31  ;;  %v4174_v36 = vld [vmem:[#allocation13_spill] sm:$0xff] }
  0x7c   : > { %2188 = vmatprep.subr.mxu0 %v4146_v12  ;;  %2220 = vmatpush3.msra.mxu1 %v4155_v63  ;;  %v3375_v12 = vand.u32 4294901760, %v181_v17  ;;  %v4162_v63 = vld [vmem:[#allocation19_spill] sm:$0xff]  ;;  %v3401_v46 = vsub.f32 %v3291_v4, %v3992_v39  ;;  %v3999_v39 = vand.u32 4294901760, %v3342_v35  ;;  %4165 = vst [vmem:[#allocation25_spill] sm:$0xff] %v3421_v58 }
  0x7d   : > { %2189 = vmatpush3.msra.mxu0 %v4149_v16  ;;  %4158 = vst [vmem:[#allocation12_spill] sm:$0xff] %v3371_v23  ;;  %v4161_v16 = vld [vmem:[#allocation17_spill] sm:$0xff]  ;;  %1084 = vmatprep.mubr.f32.mxu1 %v4147_v18  ;;  %v4173_v18 = vand.u32 4294901760, %v3371_v23 }
  0x7e   : > { %2190 = vmatprep.subr.mxu0 %v4151_v52  ;;  %4160 = vst [vmem:[#allocation23_spill] sm:$0xff] %v3375_v12  ;;  %2221 = vmatprep.subr.mxu1 %v4161_v16  ;;  %v3396_v16 = vand.u32 4294901760, %v197_v2  ;;  %v3476_v52 = vand.u32 4294901760, %v178_v6 }
  0x7f   : > { %2191 = vmatpush3.msra.mxu0 %v4154_v21  ;;  %v196_v21 = vld [vmem:[%s3907_s0 + $0x1b0] sm:$0xff]  ;;  %2222 = vmatpush3.msra.mxu1 %v4162_v63  ;;  %v3429_v63 = vsub.f32 %v181_v17, %v3375_v12  ;;  %v3460_v17 = vand.u32 4294901760, %v3418_v42 }
  0x80   : > { %982 = vmatmul.mubr.f32.vlgmr.msra.gmra.mxu0 %v4157_v26  ;;  %2230 = vmatprep.subr.mxu0 %v3172_v20  ;;  %4163 = vst [vmem:[#allocation11_spill] sm:$0xff] %v3396_v16  ;;  %v3431_v34 = vand.u32 4294901760, %v196_v21  ;;  %4172 = vst [vmem:[#allocation19_spill] sm:$0xff] %v3476_v52 }
  0x81   : > { %2231 = vmatpush3.msra.mxu0 %v3164_v62  ;;  %2223 = vmatprep.subr.mxu1 %v4164_v32  ;;  %v3426_v32 = vsub.f32 %v182_v50, %v3373_v7  ;;  %4168 = vst [vmem:[#allocation26_spill] sm:$0xff] %v3429_v63  ;;  %4170 = vst [vmem:[#allocation24_spill] sm:$0xff] %v3460_v17  ;;  %v177_v50 = vld [vmem:[%s3907_s0 + $0x118] sm:$0xff] }
  0x82   : > { %2232 = vmatprep.subr.mxu0 %v3188_v27  ;;  %2224 = vmatpush3.msra.mxu1 %v4166_v3  ;;  %4169 = vst [vmem:[#allocation15_spill] sm:$0xff] %v3431_v34  ;;  %v3447_v3 = vsub.f32 %v3307_v48, %v3995_v30  ;;  %v194_v30 = vld [vmem:[%s3907_s0 + $0x1a0] sm:$0xff] }
  0x83   : > { %2233 = vmatpush3.msra.mxu0 %v3177_v47  ;;  %4167 = vst [vmem:[#allocation14_spill] sm:$0xff] %v3426_v32  ;;  %2225 = vmatprep.subr.mxu1 %v2908_v57  ;;  %v3457_v57 = vsub.f32 %v3346_v31, %v3996_v56  ;;  %v3473_v56 = vand.u32 4294901760, %v179_v38 }
  0x84   : > { %2234 = vmatprep.subr.mxu0 %v3205_v40  ;;  %2226 = vmatpush3.msra.mxu1 %v4109_v0  ;;  %v3471_v0 = vsub.f32 %v3342_v35, %v3999_v39  ;;  %v4175_v40 = vand.u32 4294901760, %v3299_v5  ;;  %v3519_v39 = vsub.f32 %v196_v21, %v3431_v34  ;;  %v4181_v21 = vand.u32 4294901760, %v3312_v14 }
  0x85   : > { %2235 = vmatpush3.msra.mxu0 %v3207_v41  ;;  %4171 = vst [vmem:[#allocation17_spill] sm:$0xff] %v3473_v56  ;;  %1086 = vmatmul.mubr.f32.vlgmr.msra.gmra.mxu1 %v4157_v26  ;;  %v224_v41 = vcombine.high %v4174_v36, %v4174_v36  ;;  %v1236_v26 = vand.u32 4294901760, %v3447_v3  ;;  %v3516_v3 = vand.u32 4294901760, %v177_v50  ;;  %v4184_v14 = vand.u32 4294901760, %v3355_v29 }
  0x86   : > { %2236 = vmatprep.subr.mxu0 %v3224_v60  ;;  %v3490_v60 = vsub.f32 %v197_v2, %v3396_v16  ;;  %2265 = vmatprep.subr.mxu1 %v4175_v40  ;;  %v4176_v2 = vand.u32 4294901760, %v3281_v44  ;;  %v4177_v40 = vand.u32 4294901760, %v3408_v10  ;;  %v4179_v44 = vand.u32 4294901760, %v3325_v37  ;;  %v176_v37 = vld [vmem:[%s3907_s0 + $0x110] sm:$0xff] }
  0x87   : > { %2237 = vmatpush3.msra.mxu0 %v3226_v54  ;;  %v3486_v54 = vsub.f32 %v3371_v23, %v4173_v18  ;;  %v3501_v18 = vand.u32 4294901760, %v194_v30  ;;  %v1355_v23 = vand.u32 4294901760, %v3457_v57  ;;  %4178 = vst [vmem:[#allocation20_spill] sm:$0xff] %v3516_v3  ;;  %v1243_v57 = vand.u32 4294901760, %v3471_v0 }
  0x88   : > { %2238 = vmatprep.subr.mxu0 %v3237_v13  ;;  %v3499_v13 = vsub.f32 %v180_v11, %v3449_v24  ;;  %2266 = vmatpush3.msra.mxu1 %v4176_v2  ;;  %v3511_v5 = vsub.f32 %v3408_v10, %v4177_v40  ;;  %v193_v11 = vld [vmem:[%s3907_s0 + $0x198] sm:$0xff]  ;;  %v3526_v2 = vsub.f32 %v179_v38, %v3473_v56  ;;  %v4180_v40 = vand.u32 4294901760, %v3421_v58 }
  0x89   : > { %2239 = vmatpush3.msra.mxu0 %v3259_v51  ;;  %2267 = vmatprep.subr.mxu1 %v4179_v44  ;;  %v3534_v51 = vsub.f32 %v178_v6, %v3476_v52  ;;  %v4182_v0 = vand.u32 4294901760, %v3426_v32  ;;  %v192_v6 = vld [vmem:[%s3907_s0 + $0x190] sm:$0xff]  ;;  %v4186_v38 = vand.u32 4294901760, %v3429_v63  ;;  %v3572_v29 = vand.u32 4294901760, %v4174_v36 }
  0x8a   : > { %2240 = vmatprep.subr.mxu0 %v3283_v15  ;;  %v3531_v15 = vsub.f32 %v3421_v58, %v4180_v40  ;;  %2268 = vmatpush3.msra.mxu1 %v4181_v21  ;;  %v3557_v21 = vand.u32 4294901760, %v193_v11  ;;  %v191_v40 = vld [vmem:[%s3907_s0 + $0x188] sm:$0xff] }
  0x8b   : > { %2241 = vmatpush3.msra.mxu0 %v3285_v43  ;;  %v3546_v44 = vsub.f32 %v3426_v32, %v4182_v0  ;;  %v3552_v43 = vand.u32 4294901760, %v224_v41  ;;  %2269 = vmatprep.subr.mxu1 %v4184_v14  ;;  %v3562_v0 = vsub.f32 %v3429_v63, %v4186_v38  ;;  %4187 = vst [vmem:[#allocation27_spill] sm:$0xff] %v3572_v29  ;;  %v4188_v14 = vand.u32 4294901760, %v3360_v59 }
  0x8c   : > { %2242 = vmatprep.subr.mxu0 %v3327_v25  ;;  %4185 = vst [vmem:[#allocation13_spill] sm:$0xff] %v3557_v21  ;;  %v3569_v25 = vsub.f32 %v3418_v42, %v3460_v17  ;;  %v3579_v38 = vsub.f32 %v177_v50, %v3516_v3  ;;  %v3582_v32 = vand.u32 4294901760, %v176_v37  ;;  %v4189_v42 = vand.u32 4294901760, %v3383_v61  ;;  %v175_v50 = vld [vmem:[%s3907_s0 + $0x108] sm:$0xff] }
  0x8d   : > { %4183 = vst [vmem:[#allocation22_spill] sm:$0xff] %v3552_v43  ;;  %2243 = vmatpush3.msra.mxu0 %v3314_v19  ;;  %2270 = vmatpush3.msra.mxu1 %v4188_v14  ;;  %v1362_v19 = vand.u32 4294901760, %v3511_v5  ;;  %v1369_v58 = vand.u32 4294901760, %v3531_v15  ;;  %v3588_v59 = vand.u32 4294901760, %v192_v6  ;;  %v3595_v5 = vsub.f32 %v194_v30, %v3501_v18  ;;  %v190_v14 = vld [vmem:[%s3907_s0 + $0x180] sm:$0xff] }
  0x8e   : > { %2244 = vmatprep.subr.mxu0 %v3362_v1  ;;  %2271 = vmatprep.subr.mxu1 %v4189_v42  ;;  %v4191_v63 = vand.u32 4294901760, %v3388_v53  ;;  %v1257_v61 = vand.u32 4294901760, %v3546_v44  ;;  %v4192_v15 = vand.u32 4294901760, %v3490_v60  ;;  %v3610_v30 = vsub.f32 %v224_v41, %v3552_v43 }
  0x8f   : > { %2245 = vmatpush3.msra.mxu0 %v3373_v7  ;;  %4190 = vst [vmem:[#allocation28_spill] sm:$0xff] %v3588_v59  ;;  %v3604_v7 = vand.u32 4294901760, %v191_v40  ;;  %v4193_v53 = vand.u32 4294901760, %v3401_v46  ;;  %v3625_v41 = vsub.f32 %v193_v11, %v3557_v21  ;;  %v4194_v46 = vand.u32 4294901760, %v3519_v39  ;;  %1428 = vmatprep.mubr.f32.mxu1 %v3552_v43 }
  0x90   : > { %2272 = vmatpush3.msra.mxu1 %v4191_v63  ;;  %2246 = vmatprep.subr.mxu0 %v3396_v16  ;;  %v1375_v42 = vsub.f32 %v3490_v60, %v4192_v15  ;;  %v1264_v63 = vand.u32 4294901760, %v3562_v0  ;;  %v174_v15 = vld [vmem:[%s3907_s0 + $0x100] sm:$0xff]  ;;  %v3622_v16 = vsub.f32 %v4174_v36, %v3572_v29  ;;  %v3634_v44 = vand.u32 4294901760, %v175_v50 }
  0x91   : > { %2273 = vmatprep.subr.mxu1 %v4193_v53  ;;  %2247 = vmatpush3.msra.mxu0 %v3375_v12  ;;  %v1382_v0 = vsub.f32 %v3519_v39, %v4194_v46  ;;  %v3632_v53 = vsub.f32 %v176_v37, %v3582_v32  ;;  %v4195_v36 = vand.u32 4294901760, %v3499_v13  ;;  %v3641_v11 = vand.u32 4294901760, %v190_v14 }
  0x92   : > { %2274 = vmatpush3.msra.mxu1 %v1236_v26  ;;  %2248 = vmatprep.subr.mxu0 %v3431_v34  ;;  %v3645_v46 = vsub.f32 %v192_v6, %v3588_v59  ;;  %v1376_v37 = vand.u32 4294901760, %v1375_v42  ;;  %v3648_v1 = vand.u32 4294901760, %v174_v15  ;;  %v4197_v42 = vand.u32 4294901760, %v3486_v54 }
  0x93   : > { %2275 = vmatprep.subr.mxu1 %v1355_v23  ;;  %2249 = vmatpush3.msra.mxu0 %v3449_v24  ;;  %v1270_v26 = vsub.f32 %v3499_v13, %v4195_v36  ;;  %v4196_v36 = vand.u32 4294901760, %v3569_v25  ;;  %v1383_v12 = vand.u32 4294901760, %v1382_v0  ;;  %v4199_v23 = vand.u32 4294901760, %v3526_v2  ;;  %v4233_v43 = vld [vmem:[#allocation13_spill] sm:$0xff] }
  0x94   : > { %2276 = vmatpush3.msra.mxu1 %v1243_v57  ;;  %2250 = vmatprep.subr.mxu0 %v3460_v17  ;;  %v3659_v17 = vsub.f32 %v191_v40, %v3604_v7  ;;  %v4200_v57 = vand.u32 4294901760, %v3595_v5  ;;  %v3677_v0 = vsub.f32 %v190_v14, %v3641_v11 }
  0x95   : > { %2277 = vmatprep.subr.mxu1 %v1362_v19  ;;  %2251 = vmatpush3.msra.mxu0 %v3473_v56  ;;  %v1389_v34 = vsub.f32 %v3569_v25, %v4196_v36  ;;  %v3665_v19 = vsub.f32 %v175_v50, %v3634_v44  ;;  %v1277_v36 = vsub.f32 %v3526_v2, %v4199_v23  ;;  %v1271_v40 = vand.u32 4294901760, %v1270_v26 }
  0x96   : > { %2278 = vmatpush3.msra.mxu1 %v4197_v42  ;;  %2252 = vmatprep.subr.mxu0 %v3501_v18  ;;  %v1396_v54 = vsub.f32 %v3595_v5, %v4200_v57  ;;  %4201 = vst [vmem:[#allocation30_spill] sm:$0xff] %v3677_v0  ;;  %v3681_v50 = vsub.f32 %v174_v15, %v3648_v1  ;;  %v4204_v26 = vand.u32 4294901760, %v3534_v51  ;;  %v4206_v15 = vand.u32 4294901760, %v3625_v41 }
  0x97   : > { %4198 = vst [vmem:[#allocation29_spill] sm:$0xff] %v3665_v19  ;;  %2279 = vmatprep.subr.mxu1 %v1369_v58  ;;  %2253 = vmatpush3.msra.mxu0 %v3476_v52  ;;  %v4203_v58 = vand.u32 4294901760, %v3610_v30  ;;  %v1390_v14 = vand.u32 4294901760, %v1389_v34  ;;  %v4207_v57 = vand.u32 4294901760, %v3579_v38 }
  0x98   : > { %2280 = vmatpush3.msra.mxu1 %v1257_v61  ;;  %2254 = vmatprep.subr.mxu0 %v3557_v21  ;;  %4202 = vst [vmem:[#allocation31_spill] sm:$0xff] %v3681_v50  ;;  %v1284_v6 = vsub.f32 %v3534_v51, %v4204_v26  ;;  %v4205_v61 = vand.u32 4294901760, %v3622_v16  ;;  %v1403_v21 = vsub.f32 %v3625_v41, %v4206_v15  ;;  %v1278_v26 = vand.u32 4294901760, %v1277_v36 }
  0x99   : > { %v1190_v23 = vsub.f32 %v3610_v30, %v4203_v58  ;;  %2281 = vmatprep.subr.mxu1 %v1376_v37  ;;  %2255 = vmatpush3.msra.mxu0 %v3516_v3  ;;  %v1291_v37 = vsub.f32 %v3579_v38, %v4207_v57  ;;  %v4208_v3 = vand.u32 4294901760, %v3645_v46 }
  0x9a   : > { %v1196_v42 = vsub.f32 %v3622_v16, %v4205_v61  ;;  %2282 = vmatpush3.msra.mxu1 %v1264_v63  ;;  %2256 = vmatprep.subr.mxu0 %v3588_v59  ;;  %v1397_v61 = vand.u32 4294901760, %v1396_v54  ;;  %v1285_v36 = vand.u32 4294901760, %v1284_v6  ;;  %v4209_v59 = vand.u32 4294901760, %v3632_v53 }
  0x9b   : > { %2283 = vmatprep.subr.mxu1 %v1383_v12  ;;  %2257 = vmatpush3.msra.mxu0 %v3582_v32  ;;  %v1410_v15 = vsub.f32 %v3645_v46, %v4208_v3  ;;  %v1191_v63 = vand.u32 4294901760, %v1190_v23  ;;  %v4044_v12 = vand.u32 4294901760, %v3681_v50  ;;  %v1404_v34 = vand.u32 4294901760, %v1403_v21 }
  0x9c   : > { %2284 = vmatpush3.msra.mxu1 %v1271_v40  ;;  %2258 = vmatprep.subr.mxu0 %v3604_v7  ;;  %v1298_v57 = vsub.f32 %v3632_v53, %v4209_v59  ;;  %v1197_v54 = vand.u32 4294901760, %v1196_v42  ;;  %v4210_v3 = vand.u32 4294901760, %v3659_v17  ;;  %v1292_v40 = vand.u32 4294901760, %v1291_v37 }
  0x9d   : > { %2285 = vmatprep.subr.mxu1 %v1390_v14  ;;  %2259 = vmatpush3.msra.mxu0 %v3634_v44  ;;  %v4211_v6 = vand.u32 4294901760, %v3665_v19  ;;  %v1411_v59 = vand.u32 4294901760, %v1410_v15  ;;  %v4212_v14 = vand.u32 4294901760, %v3677_v0 }
  0x9e   : > { %v1417_v58 = vsub.f32 %v3659_v17, %v4210_v3  ;;  %2286 = vmatpush3.msra.mxu1 %v1278_v26  ;;  %2260 = vmatprep.subr.mxu0 %v3641_v11  ;;  %v1299_v42 = vand.u32 4294901760, %v1298_v57  ;;  %v1312_v26 = vsub.f32 %v3681_v50, %v4044_v12  ;;  %v4216_v57 = vld [vmem:[#allocation25_spill] sm:$0xff]  ;;  %v4218_v3 = vld [vmem:[#allocation14_spill] sm:$0xff]  ;;  %v4231_v12 = vld [vmem:[#allocation15_spill] sm:$0xff] }
  0x9f   : > { %v1305_v23 = vsub.f32 %v3665_v19, %v4211_v6  ;;  %2287 = vmatprep.subr.mxu1 %v1397_v61  ;;  %2261 = vmatpush3.msra.mxu0 %v3648_v1  ;;  %v1424_v21 = vsub.f32 %v3677_v0, %v4212_v14  ;;  %v4220_v6 = vld [vmem:[#allocation18_spill] sm:$0xff]  ;;  %v4223_v14 = vld [vmem:[#allocation7_spill] sm:$0xff] }
  0xa0   : > { %1192 = vmatprep.mubr.f32.mxu0 %v1191_v63  ;;  %2288 = vmatpush3.msra.mxu1 %v1285_v36  ;;  %v1418_v37 = vand.u32 4294901760, %v1417_v58  ;;  %v1313_v63 = vand.u32 4294901760, %v1312_v26  ;;  %v4213_v58 = vld [vmem:[#allocation3_spill] sm:$0xff]  ;;  %v4215_v36 = vld [vmem:[#allocation4_spill] sm:$0xff] }
  0xa1   : > { %1198 = vmatmul.mubr.f32.vlgmr.msra.gmra.mxu0 %v1197_v54  ;;  %2289 = vmatprep.subr.mxu1 %v1404_v34  ;;  %v1306_v61 = vand.u32 4294901760, %v1305_v23  ;;  %v1425_v15 = vand.u32 4294901760, %v1424_v21  ;;  %v4214_v34 = vld [vmem:[#allocation12_spill] sm:$0xff]  ;;  %v4221_v23 = vld [vmem:[#allocation26_spill] sm:$0xff]  ;;  %v4224_v21 = vld [vmem:[#allocation21_spill] sm:$0xff] }
  0xa2   : > { %2300 = vmatprep.subr.mxu0 %v3213_v22  ;;  %2290 = vmatpush3.msra.mxu1 %v1292_v40  ;;  %v4217_v54 = vld [vmem:[#allocation16_spill] sm:$0xff]  ;;  %v4219_v40 = vld [vmem:[#allocation5_spill] sm:$0xff] }
  0xa3   : > { %2301 = vmatpush3.msra.mxu0 %v3194_v33  ;;  %2291 = vmatprep.subr.mxu1 %v1411_v59  ;;  %v4222_v59 = vld [vmem:[#allocation6_spill] sm:$0xff]  ;;  %v4226_v26 = vld [vmem:[#allocation8_spill] sm:$0xff] }
  0xa4   : > { %2302 = vmatprep.subr.mxu0 %v3232_v8  ;;  %2292 = vmatpush3.msra.mxu1 %v1299_v42  ;;  %v4225_v42 = vld [vmem:[#allocation9_spill] sm:$0xff] }
  0xa5   : > { %2303 = vmatpush3.msra.mxu0 %v3219_v55  ;;  %2293 = vmatprep.subr.mxu1 %v1418_v37  ;;  %v4227_v37 = vld [vmem:[#allocation10_spill] sm:$0xff] }
  0xa6   : > { %2304 = vmatprep.subr.mxu0 %v3254_v49  ;;  %2294 = vmatpush3.msra.mxu1 %v1306_v61  ;;  %v4228_v61 = vld [vmem:[#allocation2_spill] sm:$0xff] }
  0xa7   : > { %2305 = vmatpush3.msra.mxu0 %v3244_v45  ;;  %2295 = vmatprep.subr.mxu1 %v1425_v15  ;;  %v4229_v15 = vld [vmem:[#allocation11_spill] sm:$0xff] }
  0xa8   : > { %2306 = vmatprep.subr.mxu0 %v3273_v9  ;;  %2296 = vmatpush3.msra.mxu1 %v1313_v63  ;;  %v4230_v63 = vld [vmem:[#allocation23_spill] sm:$0xff] }
  0xa9   : > { %2307 = vmatpush3.msra.mxu0 %v3266_v28  ;;  %1430 = vmatmul.mubr.f32.vlgmr.msra.gmra.mxu1 %v3572_v29  ;;  %v4232_v29 = vld [vmem:[#allocation24_spill] sm:$0xff] }
  0xaa   : > { %2308 = vmatprep.subr.mxu0 %v3291_v4  ;;  %2335 = vmatprep.subr.mxu1 %v3172_v20 }
  0xab   : > { %2309 = vmatpush3.msra.mxu0 %v3307_v48  ;;  %2336 = vmatpush3.msra.mxu1 %v3164_v62 }
  0xac   : > { %2310 = vmatprep.subr.mxu0 %v3346_v31  ;;  %2337 = vmatprep.subr.mxu1 %v3188_v27 }
  0xad   : > { %2311 = vmatpush3.msra.mxu0 %v3342_v35  ;;  %2338 = vmatpush3.msra.mxu1 %v3177_v47 }
  0xae   : > { %2312 = vmatprep.subr.mxu0 %v3408_v10  ;;  %2339 = vmatprep.subr.mxu1 %v4213_v58 }
  0xaf   : > { %2313 = vmatpush3.msra.mxu0 %v4214_v34  ;;  %2340 = vmatpush3.msra.mxu1 %v4215_v36 }
  0xb0   : > { %2314 = vmatprep.subr.mxu0 %v4216_v57  ;;  %2341 = vmatprep.subr.mxu1 %v4217_v54 }
  0xb1   : > { %2315 = vmatpush3.msra.mxu0 %v4218_v3  ;;  %2342 = vmatpush3.msra.mxu1 %v4219_v40 }
  0xb2   : > { %2316 = vmatprep.subr.mxu0 %v3490_v60  ;;  %2343 = vmatprep.subr.mxu1 %v4220_v6 }
  0xb3   : > { %2317 = vmatpush3.msra.mxu0 %v4221_v23  ;;  %2344 = vmatpush3.msra.mxu1 %v4222_v59 }
  0xb4   : > { %2318 = vmatprep.subr.mxu0 %v3519_v39  ;;  %2345 = vmatprep.subr.mxu1 %v4223_v14 }
  0xb5   : > { %2319 = vmatpush3.msra.mxu0 %v3499_v13  ;;  %2346 = vmatpush3.msra.mxu1 %v4224_v21 }
  0xb6   : > { %2320 = vmatprep.subr.mxu0 %v3569_v25  ;;  %2347 = vmatprep.subr.mxu1 %v4225_v42 }
  0xb7   : > { %2321 = vmatpush3.msra.mxu0 %v3526_v2  ;;  %2348 = vmatpush3.msra.mxu1 %v4226_v26 }
  0xb8   : > { %2322 = vmatprep.subr.mxu0 %v3595_v5  ;;  %2349 = vmatprep.subr.mxu1 %v4227_v37 }
  0xb9   : > { %2323 = vmatpush3.msra.mxu0 %v3534_v51  ;;  %2350 = vmatpush3.msra.mxu1 %v4228_v61 }
  0xba   : > { %2324 = vmatprep.subr.mxu0 %v3625_v41  ;;  %2351 = vmatprep.subr.mxu1 %v4229_v15 }
  0xbb   : > { %2325 = vmatpush3.msra.mxu0 %v3579_v38  ;;  %2352 = vmatpush3.msra.mxu1 %v4230_v63 }
  0xbc   : > { %2326 = vmatprep.subr.mxu0 %v3645_v46  ;;  %2353 = vmatprep.subr.mxu1 %v4231_v12 }
  0xbd   : > { %2327 = vmatpush3.msra.mxu0 %v3632_v53  ;;  %2354 = vmatpush3.msra.mxu1 %v3449_v24 }
  0xbe   : > { %2328 = vmatprep.subr.mxu0 %v3659_v17  ;;  %2355 = vmatprep.subr.mxu1 %v4232_v29  ;;  %v4234_v29 = vand.u32 4294901760, %v3213_v22  ;;  %v4240_v22 = vand.u32 4294901760, %v3254_v49  ;;  %v4245_v49 = vand.u32 4294901760, %v3622_v16 }
  0xbf   : > { %2329 = vmatpush3.msra.mxu0 %v3665_v19  ;;  %2356 = vmatpush3.msra.mxu1 %v3473_v56  ;;  %v4235_v19 = vld [vmem:[#allocation20_spill] sm:$0xff]  ;;  %v4236_v56 = vand.u32 4294901760, %v3194_v33  ;;  %v4241_v33 = vand.u32 4294901760, %v3244_v45  ;;  %v4247_v45 = vand.u32 4294901760, %v3307_v48  ;;  %v4256_v48 = vand.u32 4294901760, %v3519_v39 }
  0xc0   : > { %2330 = vmatprep.subr.mxu0 %v3677_v0  ;;  %2357 = vmatprep.subr.mxu1 %v3501_v18  ;;  %v4237_v0 = vld [vmem:[#allocation28_spill] sm:$0xff]  ;;  %v4260_v39 = vand.u32 4294901760, %v3595_v5 }
  0xc1   : > { %2331 = vmatpush3.msra.mxu0 %v3681_v50  ;;  %1565 = vmatprep.mubr.f32.mxu0 %v3610_v30  ;;  %v4238_v50 = vand.u32 4294901760, %v3232_v8  ;;  %v4242_v8 = vand.u32 4294901760, %v3273_v9  ;;  %v4248_v9 = vand.u32 4294901760, %v3346_v31  ;;  %v4259_v31 = vand.u32 4294901760, %v3526_v2  ;;  %v4267_v5 = vld [vmem:[#allocation24_spill] sm:$0xff] }
  0xc2   : > { %2358 = vmatpush3.msra.mxu1 %v3476_v52  ;;  %1568 = vmatmul.mubr.f32.vlgmr.msra.gmra.mxu0 %v3622_v16  ;;  %v4239_v52 = vand.u32 4294901760, %v3219_v55  ;;  %v4243_v55 = vand.u32 4294901760, %v3610_v30  ;;  %v4263_v16 = vand.u32 4294901760, %v3579_v38  ;;  %v4264_v2 = vand.u32 4294901760, %v3645_v46  ;;  %v4268_v30 = vld [vmem:[#allocation29_spill] sm:$0xff] }
  0xc3   : > { %2359 = vmatprep.subr.mxu1 %v4233_v43  ;;  %2370 = vmatprep.subr.mxu0 %v4234_v29  ;;  %v4266_v29 = vand.u32 4294901760, %v3659_v17  ;;  %v4269_v38 = vand.u32 4294901760, %v4268_v30  ;;  %v4277_v17 = vld [vmem:[#allocation27_spill] sm:$0xff] }
  0xc4   : > { %2360 = vmatpush3.msra.mxu1 %v4235_v19  ;;  %2371 = vmatpush3.msra.mxu0 %v4236_v56  ;;  %v4244_v56 = vand.u32 4294901760, %v3266_v28  ;;  %v4249_v28 = vand.u32 4294901760, %v3342_v35  ;;  %v4257_v35 = vand.u32 4294901760, %v3499_v13  ;;  %v4261_v13 = vand.u32 4294901760, %v3534_v51 }
  0xc5   : > { %2361 = vmatprep.subr.mxu1 %v4237_v0  ;;  %2372 = vmatprep.subr.mxu0 %v4238_v50  ;;  %v4265_v51 = vand.u32 4294901760, %v3632_v53  ;;  %v4271_v50 = vld [vmem:[#allocation30_spill] sm:$0xff] }
  0xc6   : > { %2362 = vmatpush3.msra.mxu1 %v3582_v32  ;;  %2373 = vmatpush3.msra.mxu0 %v4239_v52  ;;  %v4246_v52 = vand.u32 4294901760, %v3291_v4  ;;  %v4250_v4 = vand.u32 4294901760, %v3408_v10  ;;  %v4255_v10 = vand.u32 4294901760, %v4221_v23  ;;  %v4272_v46 = vand.u32 4294901760, %v4271_v50 }
  0xc7   : > { %2363 = vmatprep.subr.mxu1 %v3604_v7  ;;  %2374 = vmatprep.subr.mxu0 %v4240_v22 }
  0xc8   : > { %2364 = vmatpush3.msra.mxu1 %v3634_v44  ;;  %2375 = vmatpush3.msra.mxu0 %v4241_v33 }
  0xc9   : > { %2365 = vmatprep.subr.mxu1 %v3641_v11  ;;  %2376 = vmatprep.subr.mxu0 %v4242_v8 }
  0xca   : > { %2366 = vmatpush3.msra.mxu1 %v3648_v1  ;;  %1672 = vmatprep.mubr.f32.mxu1 %v4243_v55 }
  0xcb   : > { %2377 = vmatpush3.msra.mxu0 %v4244_v56  ;;  %1676 = vmatmul.mubr.f32.vlgmr.msra.gmra.mxu1 %v4245_v49 }
  0xcc   : > { %2378 = vmatprep.subr.mxu0 %v4246_v52  ;;  %2405 = vmatprep.subr.mxu1 %v3172_v20  ;;  %v4251_v20 = vand.u32 4294901760, %v4214_v34 }
  0xcd   : > { %2379 = vmatpush3.msra.mxu0 %v4247_v45  ;;  %2406 = vmatpush3.msra.mxu1 %v3164_v62  ;;  %v4252_v62 = vand.u32 4294901760, %v4216_v57 }
  0xce   : > { %2380 = vmatprep.subr.mxu0 %v4248_v9  ;;  %2407 = vmatprep.subr.mxu1 %v3188_v27  ;;  %v4253_v27 = vand.u32 4294901760, %v4218_v3 }
  0xcf   : > { %2381 = vmatpush3.msra.mxu0 %v4249_v28  ;;  %2408 = vmatpush3.msra.mxu1 %v3177_v47  ;;  %v4254_v47 = vand.u32 4294901760, %v3490_v60  ;;  %v4258_v60 = vand.u32 4294901760, %v3569_v25  ;;  %v4262_v25 = vand.u32 4294901760, %v3625_v41  ;;  %v4270_v41 = vld [vmem:[#allocation17_spill] sm:$0xff] }
  0xd0   : > { %2382 = vmatprep.subr.mxu0 %v4250_v4  ;;  %2409 = vmatprep.subr.mxu1 %v4213_v58  ;;  %v4275_v58 = vld [vmem:[#allocation22_spill] sm:$0xff] }
  0xd1   : > { %2383 = vmatpush3.msra.mxu0 %v4251_v20  ;;  %2410 = vmatpush3.msra.mxu1 %v4215_v36 }
  0xd2   : > { %2384 = vmatprep.subr.mxu0 %v4252_v62  ;;  %2411 = vmatprep.subr.mxu1 %v4217_v54 }
  0xd3   : > { %2385 = vmatpush3.msra.mxu0 %v4253_v27  ;;  %2412 = vmatpush3.msra.mxu1 %v4219_v40 }
  0xd4   : > { %2386 = vmatprep.subr.mxu0 %v4254_v47  ;;  %2413 = vmatprep.subr.mxu1 %v4220_v6 }
  0xd5   : > { %2387 = vmatpush3.msra.mxu0 %v4255_v10  ;;  %2414 = vmatpush3.msra.mxu1 %v4222_v59 }
  0xd6   : > { %2388 = vmatprep.subr.mxu0 %v4256_v48  ;;  %2415 = vmatprep.subr.mxu1 %v4223_v14 }
  0xd7   : > { %2389 = vmatpush3.msra.mxu0 %v4257_v35  ;;  %2416 = vmatpush3.msra.mxu1 %v4224_v21 }
  0xd8   : > { %2390 = vmatprep.subr.mxu0 %v4258_v60  ;;  %2417 = vmatprep.subr.mxu1 %v4225_v42 }
  0xd9   : > { %2391 = vmatpush3.msra.mxu0 %v4259_v31  ;;  %2418 = vmatpush3.msra.mxu1 %v4226_v26 }
  0xda   : > { %2392 = vmatprep.subr.mxu0 %v4260_v39  ;;  %2419 = vmatprep.subr.mxu1 %v4227_v37 }
  0xdb   : > { %2393 = vmatpush3.msra.mxu0 %v4261_v13  ;;  %2420 = vmatpush3.msra.mxu1 %v4228_v61 }
  0xdc   : > { %2394 = vmatprep.subr.mxu0 %v4262_v25  ;;  %2421 = vmatprep.subr.mxu1 %v4229_v15 }
  0xdd   : > { %2395 = vmatpush3.msra.mxu0 %v4263_v16  ;;  %2422 = vmatpush3.msra.mxu1 %v4230_v63 }
  0xde   : > { %2396 = vmatprep.subr.mxu0 %v4264_v2  ;;  %2423 = vmatprep.subr.mxu1 %v4231_v12  ;;  %v4273_v12 = vld [vmem:[#allocation31_spill] sm:$0xff] }
  0xdf   : > { %2397 = vmatpush3.msra.mxu0 %v4265_v51  ;;  %2424 = vmatpush3.msra.mxu1 %v3449_v24  ;;  %v4274_v53 = vand.u32 4294901760, %v4273_v12  ;;  %v4276_v24 = vld [vmem:[#allocation19_spill] sm:$0xff] }
  0xe0   : > { %2398 = vmatprep.subr.mxu0 %v4266_v29  ;;  %2425 = vmatprep.subr.mxu1 %v4267_v5 }
  0xe1   : > { %2399 = vmatpush3.msra.mxu0 %v4269_v38  ;;  %2426 = vmatpush3.msra.mxu1 %v4270_v41 }
  0xe2   : > { %2400 = vmatprep.subr.mxu0 %v4272_v46  ;;  %2427 = vmatprep.subr.mxu1 %v3501_v18 }
  0xe3   : > { %2401 = vmatpush3.msra.mxu0 %v4274_v53  ;;  %1842 = vmatprep.mubr.f32.mxu0 %v4275_v58 }
  0xe4   : > { %2428 = vmatpush3.msra.mxu1 %v4276_v24  ;;  %1844 = vmatmul.mubr.f32.vlgmr.msra.gmra.mxu0 %v4277_v17 }
  0xe5   : > { %2429 = vmatprep.subr.mxu1 %v4233_v43  ;;  %1946 = vmatprep.mubr.f32.mxu1 %v4275_v58 }
  0xe6   : > { %2430 = vmatpush3.msra.mxu1 %v4235_v19 }
  0xe7   : > { %2431 = vmatprep.subr.mxu1 %v4237_v0 }
  0xe8   : > { %2432 = vmatpush3.msra.mxu1 %v3582_v32 }
  0xe9   : > { %2433 = vmatprep.subr.mxu1 %v3604_v7 }
  0xea   : > { %2434 = vmatpush3.msra.mxu1 %v3634_v44 }
  0xeb   : > { %2435 = vmatprep.subr.mxu1 %v3641_v11 }
  0xec   : > { %2436 = vmatpush3.msra.mxu1 %v3648_v1 }
  0xed   : > { %1948 = vmatmul.mubr.f32.vlgmr.msra.gmra.mxu1 %v4277_v17 }
  0xfd   : > { %v2087_v34 = vpop.f32.mrf.mxu1 }
  0xff   : > { %v2088_v36 = vpop.f32.mrf.mxu1 }
 0x100   : > { %v2052_v18 = vpop.f32.mrf.mxu0  ;;  %v2089_v6 = vadd.f32 %v2088_v36, %v2087_v34 }
 0x102   : > { %v2053_v43 = vpop.f32.mrf.mxu0 }
 0x103   : > { %v2054_v23 = vadd.f32 %v2053_v43, %v2052_v18 }
 0x105   : > { %v570_v14 = vadd.f32 %v2089_v6, %v2054_v23 }
 0x120   : > { %v2122_v19 = vpop.f32.mrf.mxu0 }
 0x122   : > { %v2123_v57 = vpop.f32.mrf.mxu0  ;;  %v2157_v54 = vpop.f32.mrf.mxu1 }
 0x123   : > { %v2124_v11 = vadd.f32 %v2123_v57, %v2122_v19 }
 0x124   : > { %v2158_v3 = vpop.f32.mrf.mxu1 }
 0x125   : > { %v2159_v21 = vadd.f32 %v2158_v3, %v2157_v54  ;;  %v708_v26 = vadd.f32 %v2124_v11, %v570_v14 }
 0x127   : > { %v816_v15 = vadd.f32 %v2159_v21, %v708_v26 }
 0x140   : > { %v2192_v0 = vpop.f32.mrf.mxu0 }
 0x142   : > { %v2193_v32 = vpop.f32.mrf.mxu0 }
 0x143   : > { %v2194_v37 = vadd.f32 %v2193_v32, %v2192_v0 }
 0x145   : > { %v2227_v40 = vpop.f32.mrf.mxu1  ;;  %v984_v8 = vadd.f32 %v2194_v37, %v816_v15 }
 0x147   : > { %v2228_v44 = vpop.f32.mrf.mxu1 }
 0x148   : > { %v2229_v63 = vadd.f32 %v2228_v44, %v2227_v40 }
 0x14a   : > { %v1088_v49 = vadd.f32 %v2229_v63, %v984_v8 }
 0x161   : > { %v2262_v7 = vpop.f32.mrf.mxu0 }
 0x163   : > { %v2263_v59 = vpop.f32.mrf.mxu0 }
 0x164   : > { %v2264_v55 = vadd.f32 %v2263_v59, %v2262_v7 }
 0x166   : > { %v1200_v9 = vadd.f32 %v2264_v55, %v1088_v49 }
 0x169   : > { %v2297_v1 = vpop.f32.mrf.mxu1 }
 0x16b   : > { %v2298_v61 = vpop.f32.mrf.mxu1 }
 0x16c   : > { %v2299_v52 = vadd.f32 %v2298_v61, %v2297_v1 }
 0x16e   : > { %v1432_v20 = vadd.f32 %v2299_v52, %v1200_v9 }
 0x182   : > { %v2332_v42 = vpop.f32.mrf.mxu0 }
 0x184   : > { %v2333_v22 = vpop.f32.mrf.mxu0 }
 0x185   : > { %v2334_v28 = vadd.f32 %v2333_v22, %v2332_v42 }
 0x187   : > { %v1570_v27 = vadd.f32 %v2334_v28, %v1432_v20 }
 0x18b   : > { %v2367_v33 = vpop.f32.mrf.mxu1 }
 0x18d   : > { %v2368_v45 = vpop.f32.mrf.mxu1 }
 0x18e   : > { %v2369_v62 = vadd.f32 %v2368_v45, %v2367_v33 }
 0x190   : > { %v1678_v48 = vadd.f32 %v2369_v62, %v1570_v27 }
 0x1a4   : > { %v2402_v56 = vpop.f32.mrf.mxu0 }
 0x1a6   : > { %v2403_v4 = vpop.f32.mrf.mxu0 }
 0x1a7   : > { %v2404_v47 = vadd.f32 %v2403_v4, %v2402_v56 }
 0x1a9   : > { %v1846_v60 = vadd.f32 %v2404_v47, %v1678_v48 }
 0x1ad   : > { %v2437_v10 = vpop.f32.mrf.mxu1 }
 0x1af   : > { %v2438_v35 = vpop.f32.mrf.mxu1 }
 0x1b0   : > { %v2439_v31 = vadd.f32 %v2438_v35, %v2437_v10 }
 0x1b2   : > { %v1950_v39 = vadd.f32 %v2439_v31, %v1846_v60 }
 0x1b4   : > { %v1954_v13 = vsel %vm1953_vm0, %v1950_v39, 0.0 }
 0x1b5   : > { %1955 = vst [vmem:[%s141_s17] sm:$0xf] %v1954_v13 }
 0x1b6 PF: > { %s12_s9 = sadd.s32 1, %s2456_s9  }
 0x1b7   : > { %p9_p4 = scmp.ge.s32.totalorder %s12_s9, 4  }
 0x1b9   :  { %11 = sbr.rel (!%p9_p4) target bundleno = 1 (0x1), region = 58 }

</bundles_post_ra>
